<compile_context>
chip_gen: v7x
topology: tpu7x:2x2x1
jax: 0.10.0
libtpu: 0.0.40
codegen_flags: <defaults>
</compile_context>

<pallas_src>
import functools

import jax
import jax.numpy as jnp
from jax.experimental import pallas as pl
from jax.experimental.pallas import tpu as pltpu


# --------------------------- fused LSTM+head kernel ---------------------------
def _fused_lstm_head_kernel(L, H, Tc, Bb, In, O, mxu_dtype,
                            x_ref, wih0_ref, b0_ref,
                            wih_rest_ref, whh_ref, b_rest_ref,
                            wout_ref, bout_ref, h0_ref, c0_ref,
                            out_ref, hN_ref, cN_ref,
                            h_sc, c_sc, y_sc, g_sc):
    t = pl.program_id(1)

    @pl.when(t == 0)
    def _():
        h_sc[...] = h0_ref[...].astype(jnp.float32)
        c_sc[...] = c0_ref[...].astype(jnp.float32)

    def cast(v):
        return v.astype(mxu_dtype)

    def run_layer(layer_idx):
        """Serial recurrence over the Tc steps of this block for one layer.
        Reads the precomputed input projection from g_sc and writes per-step h
        into y_sc; both are (Tc*Bb, .) so every row slice is sublane-aligned."""
        whh_c = cast(whh_ref[layer_idx])      # resident weight, cast once/block
        h = h_sc[layer_idx]
        c = c_sc[layer_idx]

        def step(row, h, c):
            gates = (g_sc[pl.ds(row, Bb), :]
                     + jnp.dot(cast(h), whh_c,
                               preferred_element_type=jnp.float32))
            # Activate the full (Bb, 4H) vreg once per function (2 EUP ops),
            # then slice.  PyTorch gate order: i, f, g, o.
            sg = jax.nn.sigmoid(gates)
            th = jnp.tanh(gates)
            i_g = sg[:, 0 * H:1 * H]
            f_g = sg[:, 1 * H:2 * H]
            g_g = th[:, 2 * H:3 * H]
            o_g = sg[:, 3 * H:4 * H]
            c = f_g * c + i_g * g_g
            h = o_g * jnp.tanh(c)
            y_sc[pl.ds(row, Bb), :] = h
            return h, c

        if Tc <= 32:
            for s in range(Tc):               # static, fully unrolled
                h, c = step(s * Bb, h, c)
        else:
            def body(s, carry):
                hh, cc = carry
                row = pl.multiple_of(s * Bb, Bb)
                return step(row, hh, cc)
            h, c = jax.lax.fori_loop(0, Tc, body, (h, c), unroll=8)

        h_sc[layer_idx] = h
        c_sc[layer_idx] = c

    # ---- layer 0: one batched input projection for the whole time block ----
    x_flat = x_ref[...].reshape(Tc * Bb, In).astype(jnp.float32)
    if In == 1:
        # K == 1 degenerate matmul: VPU broadcast-multiply, skip the MXU.
        g_sc[...] = x_flat * wih0_ref[...] + b0_ref[...]
    else:
        g_sc[...] = (jnp.dot(cast(x_flat), wih0_ref[...],
                             preferred_element_type=jnp.float32)
                     + b0_ref[...])
    run_layer(0)

    # ---- layers 1..L-1: batched projection of previous layer's output ----
    for l in range(1, L):
        g_sc[...] = (jnp.dot(cast(y_sc[...]), wih_rest_ref[l - 1],
                             preferred_element_type=jnp.float32)
                     + b_rest_ref[l - 1])
        run_layer(l)

    # ---- linear head over the whole block, lane-dense (time-last) output ----
    if O == 1:
        # N == 1 degenerate matmul: 2-D transpose + VPU multiply + sublane
        # reduce instead of a 1-useful-row MXU pass.
        yT = jnp.transpose(y_sc[...])                              # (H, Tc*Bb)
        head_tl = (jnp.sum(wout_ref[...].astype(jnp.float32) * yT,
                           axis=0, keepdims=True)
                   + bout_ref[...])                                # (1, Tc*Bb)
    else:
        out_flat = (jnp.dot(cast(y_sc[...]), wout_ref[...],
                            preferred_element_type=jnp.float32)
                    + bout_ref[...])                               # (Tc*Bb, O)
        head_tl = jnp.transpose(out_flat)                          # (O, Tc*Bb)
    out_ref[...] = head_tl.reshape(1, O, Tc * Bb).astype(out_ref.dtype)

    @pl.when(t == pl.num_programs(1) - 1)
    def _():
        hN_ref[...] = h_sc[...].astype(hN_ref.dtype)
        cN_ref[...] = c_sc[...].astype(cN_ref.dtype)


# ------------------------------ block pickers ---------------------------------
def _pick_time_block(T, Bb, target):
    """Largest Tc <= target dividing T with a 128-lane-multiple output block,
    else a single full-T block (full-dim blocks are always legal)."""
    tc = min(target, T)
    for cand in range(tc, 0, -1):
        if T % cand == 0 and (cand * Bb) % 128 == 0:
            return cand
    return T


def _pick_batch_block(Bp, target=256):
    bb = min(Bp, max(8, (target // 8) * 8))
    while Bp % bb != 0:
        bb -= 8
    return bb


# ------------------------------ Module forward --------------------------------
def my_l2lstm_forward(params, x, h_state, *, block_t=128, mxu_bf16=False):
    """Equivalent of MyL2LSTM.forward(x, h_state).
    x: (B, T, input_size); h_state: ((L, B, H), (L, B, H))."""
    h0_all, c0_all = h_state
    L, B, H = h0_all.shape
    _, T, In = x.shape
    O = params["out_w"].shape[0]
    fourH = 4 * H
    mxu_dtype = jnp.bfloat16 if mxu_bf16 else jnp.float32

    # ---- batch padding / tiling: sublane-aligned Bb (multiple of 8) ----
    Bp = max(8, ((B + 7) // 8) * 8)
    Bb = _pick_batch_block(Bp)
    nb = Bp // Bb
    Tc = _pick_time_block(T, Bb, block_t)
    nt = T // Tc

    # ---- pre-transposed / pre-summed / pre-cast params (folded once by jit) --
    wih0 = jnp.transpose(params["w_ih_l0"]).astype(mxu_dtype)        # (In, 4H)
    b0 = (params["b_ih_l0"] + params["b_hh_l0"]).reshape(1, fourH).astype(jnp.float32)
    whh = jnp.stack([jnp.transpose(params[f"w_hh_l{l}"])
                     for l in range(L)], 0).astype(mxu_dtype)        # (L, H, 4H)
    if L > 1:
        wih_rest = jnp.stack([jnp.transpose(params[f"w_ih_l{l}"])
                              for l in range(1, L)], 0).astype(mxu_dtype)
        b_rest = jnp.stack(
            [(params[f"b_ih_l{l}"] + params[f"b_hh_l{l}"]).reshape(1, fourH)
             for l in range(1, L)], 0).astype(jnp.float32)
    else:
        # TODO(synk): when L == 1 these dummies are still DMA'd (waste only).
        wih_rest = jnp.zeros((1, H, fourH), mxu_dtype)
        b_rest = jnp.zeros((1, 1, fourH), jnp.float32)
    Lr = wih_rest.shape[0]
    wout = jnp.transpose(params["out_w"]).astype(mxu_dtype)          # (H, O)
    bout = params["out_b"].reshape(1, O).astype(jnp.float32)

    # ---- layouts: batch-block major, time major, batch minor, pre-flattened --
    xp = jnp.transpose(x, (1, 0, 2))                                 # (T, B, In)
    xp = jnp.pad(xp, ((0, 0), (0, Bp - B), (0, 0)))                  # (T, Bp, In)
    x_hbm = (xp.reshape(T, nb, Bb, In).transpose(1, 0, 2, 3)
             .reshape(nb, T * Bb, In))                               # (nb, T*Bb, In)
    h0p = jnp.pad(h0_all, ((0, 0), (0, Bp - B), (0, 0)))
    c0p = jnp.pad(c0_all, ((0, 0), (0, Bp - B), (0, 0)))

    kernel = functools.partial(_fused_lstm_head_kernel,
                               L, H, Tc, Bb, In, O, mxu_dtype)

    # rough VMEM budget: double-buffered blocks + resident weights + scratch
    est = 4 * (2 * (Tc * Bb * In + O * Tc * Bb + 4 * L * Bb * H)
               + 2 * (In * fourH + (Lr + L) * H * fourH + H * O
                      + (Lr + 2) * fourH + O)
               + (2 * L * Bb * H + 5 * Tc * Bb * H))
    vmem_limit = int(min(128 * 2 ** 20, max(32 * 2 ** 20, 2 * est)))

    out_hbm, hN, cN = pl.pallas_call(
        kernel,
        out_shape=(jax.ShapeDtypeStruct((nb, O, T * Bb), x.dtype),
                   jax.ShapeDtypeStruct((L, Bp, H), x.dtype),
                   jax.ShapeDtypeStruct((L, Bp, H), x.dtype)),
        grid_spec=pltpu.PrefetchScalarGridSpec(
            num_scalar_prefetch=0,
            grid=(nb, nt),
            in_specs=[
                pl.BlockSpec((1, Tc * Bb, In), lambda b, t: (b, t, 0)),    # x
                pl.BlockSpec((In, fourH), lambda b, t: (0, 0)),            # W_ih0^T
                pl.BlockSpec((1, fourH), lambda b, t: (0, 0)),             # b0
                pl.BlockSpec((Lr, H, fourH), lambda b, t: (0, 0, 0)),      # W_ih rest^T
                pl.BlockSpec((L, H, fourH), lambda b, t: (0, 0, 0)),       # W_hh^T
                pl.BlockSpec((Lr, 1, fourH), lambda b, t: (0, 0, 0)),      # b rest
                pl.BlockSpec((H, O), lambda b, t: (0, 0)),                 # W_out^T
                pl.BlockSpec((1, O), lambda b, t: (0, 0)),                 # b_out
                pl.BlockSpec((L, Bb, H), lambda b, t: (0, b, 0)),          # h0
                pl.BlockSpec((L, Bb, H), lambda b, t: (0, b, 0)),          # c0
            ],
            out_specs=[
                pl.BlockSpec((1, O, Tc * Bb), lambda b, t: (b, 0, t)),     # head out
                pl.BlockSpec((L, Bb, H), lambda b, t: (0, b, 0)),          # h final
                pl.BlockSpec((L, Bb, H), lambda b, t: (0, b, 0)),          # c final
            ],
            scratch_shapes=[pltpu.VMEM((L, Bb, H), jnp.float32),           # h state
                            pltpu.VMEM((L, Bb, H), jnp.float32),           # c state
                            pltpu.VMEM((Tc * Bb, H), jnp.float32),         # layer out
                            pltpu.VMEM((Tc * Bb, fourH), jnp.float32)],    # gates
        ),
        compiler_params=pltpu.CompilerParams(
            dimension_semantics=("parallel", "arbitrary"),
            vmem_limit_bytes=vmem_limit),
    )(x_hbm, wih0, b0, wih_rest, whh, b_rest, wout, bout, h0p, c0p)

    # Un-scramble the lane-dense (nb, O, T*Bb) slab back to (B, T, O).
    out_bf = (out_hbm.reshape(nb, O, T, Bb).transpose(0, 3, 2, 1)
              .reshape(Bp, T, O)[:B])
    hN = hN[:, :B, :]
    cN = cN[:, :B, :]
    # torch.squeeze(output) happens before the Linear and only the last dim
    # feeds the Linear, so it is equivalent to dropping size-1 batch/time dims
    # of the (B, T, O) head output (never the O dim).
    squeeze_axes = tuple(ax for ax in (0, 1) if out_bf.shape[ax] == 1)
    out = jnp.squeeze(out_bf, axis=squeeze_axes) if squeeze_axes else out_bf
    return out, (hN, cN)


# --------------------------- pure-JAX reference --------------------------------
def my_l2lstm_forward_ref(params, x, h_state):
    h_all, c_all = h_state
    L = h_all.shape[0]
    inp = x
    hs, cs = [], []
    for l in range(L):
        w_ih = params[f"w_ih_l{l}"]
        w_hh = params[f"w_hh_l{l}"]
        b = params[f"b_ih_l{l}"] + params[f"b_hh_l{l}"]
        H = w_hh.shape[1]
        h, c = h_all[l], c_all[l]
        ys = []
        for s in range(inp.shape[1]):
            xt = inp[:, s, :]
            g = xt @ w_ih.T + h @ w_hh.T + b
            i = jax.nn.sigmoid(g[:, :H])
            f = jax.nn.sigmoid(g[:, H:2 * H])
            gg = jnp.tanh(g[:, 2 * H:3 * H])
            o = jax.nn.sigmoid(g[:, 3 * H:4 * H])
            c = f * c + i * gg
            h = o * jnp.tanh(c)
            ys.append(h)
        inp = jnp.stack(ys, axis=1)
        hs.append(h)
        cs.append(c)
    sq = jnp.squeeze(inp)
    out = sq @ params["out_w"].T + params["out_b"]
    return out, (jnp.stack(hs, 0), jnp.stack(cs, 0))


# --------------------------------- params --------------------------------------
def init_params(key, input_size, num_layers, hidden_size, output_size):
    params = {}
    stdv = 1.0 / (hidden_size ** 0.5)
    for l in range(num_layers):
        in_sz = input_size if l == 0 else hidden_size
        key, k1, k2, k3, k4 = jax.random.split(key, 5)
        params[f"w_ih_l{l}"] = jax.random.uniform(
            k1, (4 * hidden_size, in_sz), jnp.float32, -stdv, stdv)
        params[f"w_hh_l{l}"] = jax.random.uniform(
            k2, (4 * hidden_size, hidden_size), jnp.float32, -stdv, stdv)
        params[f"b_ih_l{l}"] = jax.random.uniform(
            k3, (4 * hidden_size,), jnp.float32, -stdv, stdv)
        params[f"b_hh_l{l}"] = jax.random.uniform(
            k4, (4 * hidden_size,), jnp.float32, -stdv, stdv)
    key, k5, k6 = jax.random.split(key, 3)
    params["out_w"] = jax.random.uniform(
        k5, (output_size, hidden_size), jnp.float32, -stdv, stdv)
    params["out_b"] = jax.random.uniform(
        k6, (output_size,), jnp.float32, -stdv, stdv)
    return params


if __name__ == "__main__":
    INPUT_SIZE = 1
    NUM_LAYERS = 2
    HIDDEN_SIZE = 32
    OUTPUT_SIZE = 1
    BATCH = 2
    SEQ = 8

    key = jax.random.PRNGKey(0)
    key, kx = jax.random.split(key)
    params = init_params(key, INPUT_SIZE, NUM_LAYERS, HIDDEN_SIZE, OUTPUT_SIZE)

    x = jax.random.normal(kx, (BATCH, SEQ, INPUT_SIZE), jnp.float32)
    # init_hidden equivalent: zeros of (num_layers, batch, hidden) for h and c.
    h0 = jnp.zeros((NUM_LAYERS, BATCH, HIDDEN_SIZE), jnp.float32)
    c0 = jnp.zeros((NUM_LAYERS, BATCH, HIDDEN_SIZE), jnp.float32)

    out_ref, (hN_ref, cN_ref) = my_l2lstm_forward_ref(params, x, (h0, c0))

    # fp32-MXU path: tight tolerance vs. the fp32 reference.
    fwd = jax.jit(functools.partial(my_l2lstm_forward, mxu_bf16=False))
    out, (hN, cN) = jax.block_until_ready(fwd(params, x, (h0, c0)))
    assert out.shape == (BATCH, SEQ, OUTPUT_SIZE)
    assert hN.shape == (NUM_LAYERS, BATCH, HIDDEN_SIZE)
    assert jnp.allclose(out, out_ref, atol=1e-5)
    assert jnp.allclose(hN, hN_ref, atol=1e-5)
    assert jnp.allclose(cN, cN_ref, atol=1e-5)

    # bf16-MXU-input perf path (fp32 accumulation): looser tolerance.
    fwd_bf16 = jax.jit(functools.partial(my_l2lstm_forward, mxu_bf16=True))
    out_b, (hN_b, cN_b) = jax.block_until_ready(fwd_bf16(params, x, (h0, c0)))
    assert out_b.shape == (BATCH, SEQ, OUTPUT_SIZE)
    assert jnp.allclose(out_b, out_ref, atol=5e-2)
    assert jnp.allclose(hN_b, hN_ref, atol=5e-2)

    print("KERNEL_OK")
</pallas_src>

<mosaic_0001>
module attributes {stable_mosaic.version = 11 : i64} {
  func.func @_fused_lstm_head_kernel(%arg0: i32, %arg1: i32, %arg2: memref<1x64x1xf32, #tpu.memory_space<vmem>>, %arg3: memref<1x128xf32, #tpu.memory_space<vmem>>, %arg4: memref<1x128xf32, #tpu.memory_space<vmem>>, %arg5: memref<1x32x128xf32, #tpu.memory_space<vmem>>, %arg6: memref<2x32x128xf32, #tpu.memory_space<vmem>>, %arg7: memref<1x1x128xf32, #tpu.memory_space<vmem>>, %arg8: memref<32x1xf32, #tpu.memory_space<vmem>>, %arg9: memref<1x1xf32, #tpu.memory_space<vmem>>, %arg10: memref<2x8x32xf32, #tpu.memory_space<vmem>>, %arg11: memref<2x8x32xf32, #tpu.memory_space<vmem>>, %arg12: memref<1x1x64xf32, #tpu.memory_space<vmem>>, %arg13: memref<2x8x32xf32, #tpu.memory_space<vmem>>, %arg14: memref<2x8x32xf32, #tpu.memory_space<vmem>>, %arg15: memref<2x8x32xf32, #tpu.memory_space<vmem>>, %arg16: memref<2x8x32xf32, #tpu.memory_space<vmem>>, %arg17: memref<64x32xf32, #tpu.memory_space<vmem>>, %arg18: memref<64x128xf32, #tpu.memory_space<vmem>>) attributes {dimension_semantics = [#tpu.dimension_semantics<parallel>, #tpu.dimension_semantics<arbitrary>], iteration_bounds = array<i64: 1, 1>, scalar_prefetch = 0 : i64, scratch_operands = 4 : i64, tpu.core_type = #tpu.core_type<tc>, window_params = [{transform_indices = @transform_0, window_bounds = array<i64: 1, 64, 1>}, {pipeline_mode = #tpu.pipeline_mode<synchronous>, transform_indices = @transform_1, window_bounds = array<i64: 1, 128>}, {pipeline_mode = #tpu.pipeline_mode<synchronous>, transform_indices = @transform_2, window_bounds = array<i64: 1, 128>}, {pipeline_mode = #tpu.pipeline_mode<synchronous>, transform_indices = @transform_3, window_bounds = array<i64: 1, 32, 128>}, {pipeline_mode = #tpu.pipeline_mode<synchronous>, transform_indices = @transform_4, window_bounds = array<i64: 2, 32, 128>}, {pipeline_mode = #tpu.pipeline_mode<synchronous>, transform_indices = @transform_5, window_bounds = array<i64: 1, 1, 128>}, {pipeline_mode = #tpu.pipeline_mode<synchronous>, transform_indices = @transform_6, window_bounds = array<i64: 32, 1>}, {pipeline_mode = #tpu.pipeline_mode<synchronous>, transform_indices = @transform_7, window_bounds = array<i64: 1, 1>}, {transform_indices = @transform_8, window_bounds = array<i64: 2, 8, 32>}, {transform_indices = @transform_9, window_bounds = array<i64: 2, 8, 32>}, {transform_indices = @transform_10, window_bounds = array<i64: 1, 1, 64>}, {transform_indices = @transform_11, window_bounds = array<i64: 2, 8, 32>}, {transform_indices = @transform_12, window_bounds = array<i64: 2, 8, 32>}]} {
    %c0_i32 = arith.constant 0 : i32
    %0 = arith.cmpi eq, %arg1, %c0_i32 : i32
    %1 = arith.extui %0 : i1 to i32
    %c0_i32_0 = arith.constant 0 : i32
    %2 = arith.cmpi ne, %1, %c0_i32_0 : i32
    scf.if %2 {
      %c0_149 = arith.constant 0 : index
      %c0_150 = arith.constant 0 : index
      %c0_151 = arith.constant 0 : index
      %365 = vector.load %arg10[%c0_149, %c0_150, %c0_151] : memref<2x8x32xf32, #tpu.memory_space<vmem>>, vector<2x8x32xf32>
      %c0_152 = arith.constant 0 : index
      %c0_153 = arith.constant 0 : index
      %c0_154 = arith.constant 0 : index
      %366 = vector.load %arg15[%c0_152, %c0_153, %c0_154] : memref<2x8x32xf32, #tpu.memory_space<vmem>>, vector<2x8x32xf32>
      tpu.vector_store %arg15[%c0_152, %c0_153, %c0_154], %365 {strides = array<i32>} : memref<2x8x32xf32, #tpu.memory_space<vmem>>, vector<2x8x32xf32>,
      %c0_155 = arith.constant 0 : index
      %c0_156 = arith.constant 0 : index
      %c0_157 = arith.constant 0 : index
      %367 = vector.load %arg11[%c0_155, %c0_156, %c0_157] : memref<2x8x32xf32, #tpu.memory_space<vmem>>, vector<2x8x32xf32>
      %c0_158 = arith.constant 0 : index
      %c0_159 = arith.constant 0 : index
      %c0_160 = arith.constant 0 : index
      %368 = vector.load %arg16[%c0_158, %c0_159, %c0_160] : memref<2x8x32xf32, #tpu.memory_space<vmem>>, vector<2x8x32xf32>
      tpu.vector_store %arg16[%c0_158, %c0_159, %c0_160], %367 {strides = array<i32>} : memref<2x8x32xf32, #tpu.memory_space<vmem>>, vector<2x8x32xf32>,
    } else {
    }
    %c0 = arith.constant 0 : index
    %c0_1 = arith.constant 0 : index
    %c0_2 = arith.constant 0 : index
    %3 = vector.load %arg2[%c0, %c0_1, %c0_2] : memref<1x64x1xf32, #tpu.memory_space<vmem>>, vector<1x64x1xf32>
    %4 = vector.shape_cast %3 : vector<1x64x1xf32> to vector<64x1xf32>
    %c0_3 = arith.constant 0 : index
    %c0_4 = arith.constant 0 : index
    %5 = vector.load %arg3[%c0_3, %c0_4] : memref<1x128xf32, #tpu.memory_space<vmem>>, vector<1x128xf32>
    %6 = vector.broadcast %4 : vector<64x1xf32> to vector<64x128xf32>
    %7 = vector.broadcast %5 : vector<1x128xf32> to vector<64x128xf32>
    %8 = arith.mulf %6, %7 : vector<64x128xf32>
    %c0_5 = arith.constant 0 : index
    %c0_6 = arith.constant 0 : index
    %9 = vector.load %arg4[%c0_5, %c0_6] : memref<1x128xf32, #tpu.memory_space<vmem>>, vector<1x128xf32>
    %10 = vector.broadcast %9 : vector<1x128xf32> to vector<64x128xf32>
    %11 = arith.addf %8, %10 : vector<64x128xf32>
    %c0_7 = arith.constant 0 : index
    %c0_8 = arith.constant 0 : index
    %12 = vector.load %arg18[%c0_7, %c0_8] : memref<64x128xf32, #tpu.memory_space<vmem>>, vector<64x128xf32>
    tpu.vector_store %arg18[%c0_7, %c0_8], %11 {strides = array<i32>} : memref<64x128xf32, #tpu.memory_space<vmem>>, vector<64x128xf32>,
    %c0_9 = arith.constant 0 : index
    %c0_10 = arith.constant 0 : index
    %c0_11 = arith.constant 0 : index
    %13 = vector.load %arg6[%c0_9, %c0_10, %c0_11] : memref<2x32x128xf32, #tpu.memory_space<vmem>>, vector<1x32x128xf32>
    %14 = vector.shape_cast %13 : vector<1x32x128xf32> to vector<32x128xf32>
    %c0_12 = arith.constant 0 : index
    %c0_13 = arith.constant 0 : index
    %c0_14 = arith.constant 0 : index
    %15 = vector.load %arg15[%c0_12, %c0_13, %c0_14] : memref<2x8x32xf32, #tpu.memory_space<vmem>>, vector<1x8x32xf32>
    %16 = vector.shape_cast %15 : vector<1x8x32xf32> to vector<8x32xf32>
    %c0_15 = arith.constant 0 : index
    %c0_16 = arith.constant 0 : index
    %c0_17 = arith.constant 0 : index
    %17 = vector.load %arg16[%c0_15, %c0_16, %c0_17] : memref<2x8x32xf32, #tpu.memory_space<vmem>>, vector<1x8x32xf32>
    %18 = vector.shape_cast %17 : vector<1x8x32xf32> to vector<8x32xf32>
    %c0_18 = arith.constant 0 : index
    %c0_19 = arith.constant 0 : index
    %19 = vector.load %arg18[%c0_18, %c0_19] : memref<64x128xf32, #tpu.memory_space<vmem>>, vector<8x128xf32>
    %cst = arith.constant dense<0.000000e+00> : vector<8x128xf32>
    %20 = tpu.matmul %16, %14, %cst {dimension_numbers = #tpu.dot_dimension_numbers<[1], [0], [0], [1], [0, 0, 1, 1], [], []>} : vector<8x32xf32>, vector<32x128xf32>, vector<8x128xf32> -> vector<8x128xf32>
    %21 = arith.addf %19, %20 : vector<8x128xf32>
    %22 = arith.negf %21 : vector<8x128xf32>
    %23 = math.exp %22 : vector<8x128xf32>
    %cst_20 = arith.constant 1.000000e+00 : f32
    %24 = vector.broadcast %cst_20 : f32 to vector<8x128xf32>
    %25 = arith.addf %24, %23 : vector<8x128xf32>
    %26 = arith.divf %24, %25 : vector<8x128xf32>
    %27 = math.tanh %21 : vector<8x128xf32>
    %28 = vector.extract_strided_slice %26 {offsets = [0, 0], sizes = [8, 32], strides = [1, 1]} : vector<8x128xf32> to vector<8x32xf32>
    %29 = vector.extract_strided_slice %26 {offsets = [0, 32], sizes = [8, 32], strides = [1, 1]} : vector<8x128xf32> to vector<8x32xf32>
    %30 = vector.extract_strided_slice %27 {offsets = [0, 64], sizes = [8, 32], strides = [1, 1]} : vector<8x128xf32> to vector<8x32xf32>
    %31 = vector.extract_strided_slice %26 {offsets = [0, 96], sizes = [8, 32], strides = [1, 1]} : vector<8x128xf32> to vector<8x32xf32>
    %32 = arith.mulf %29, %18 : vector<8x32xf32>
    %33 = arith.mulf %28, %30 : vector<8x32xf32>
    %34 = arith.addf %32, %33 : vector<8x32xf32>
    %35 = math.tanh %34 : vector<8x32xf32>
    %36 = arith.mulf %31, %35 : vector<8x32xf32>
    %c0_21 = arith.constant 0 : index
    %c0_22 = arith.constant 0 : index
    %37 = vector.load %arg17[%c0_21, %c0_22] : memref<64x32xf32, #tpu.memory_space<vmem>>, vector<8x32xf32>
    tpu.vector_store %arg17[%c0_21, %c0_22], %36 {strides = array<i32>} : memref<64x32xf32, #tpu.memory_space<vmem>>, vector<8x32xf32>,
    %c8 = arith.constant 8 : index
    %c0_23 = arith.constant 0 : index
    %38 = vector.load %arg18[%c8, %c0_23] : memref<64x128xf32, #tpu.memory_space<vmem>>, vector<8x128xf32>
    %cst_24 = arith.constant dense<0.000000e+00> : vector<8x128xf32>
    %39 = tpu.matmul %36, %14, %cst_24 {dimension_numbers = #tpu.dot_dimension_numbers<[1], [0], [0], [1], [0, 0, 1, 1], [], []>} : vector<8x32xf32>, vector<32x128xf32>, vector<8x128xf32> -> vector<8x128xf32>
    %40 = arith.addf %38, %39 : vector<8x128xf32>
    %41 = arith.negf %40 : vector<8x128xf32>
    %42 = math.exp %41 : vector<8x128xf32>
    %cst_25 = arith.constant 1.000000e+00 : f32
    %43 = vector.broadcast %cst_25 : f32 to vector<8x128xf32>
    %44 = arith.addf %43, %42 : vector<8x128xf32>
    %45 = arith.divf %43, %44 : vector<8x128xf32>
    %46 = math.tanh %40 : vector<8x128xf32>
    %47 = vector.extract_strided_slice %45 {offsets = [0, 0], sizes = [8, 32], strides = [1, 1]} : vector<8x128xf32> to vector<8x32xf32>
    %48 = vector.extract_strided_slice %45 {offsets = [0, 32], sizes = [8, 32], strides = [1, 1]} : vector<8x128xf32> to vector<8x32xf32>
    %49 = vector.extract_strided_slice %46 {offsets = [0, 64], sizes = [8, 32], strides = [1, 1]} : vector<8x128xf32> to vector<8x32xf32>
    %50 = vector.extract_strided_slice %45 {offsets = [0, 96], sizes = [8, 32], strides = [1, 1]} : vector<8x128xf32> to vector<8x32xf32>
    %51 = arith.mulf %48, %34 : vector<8x32xf32>
    %52 = arith.mulf %47, %49 : vector<8x32xf32>
    %53 = arith.addf %51, %52 : vector<8x32xf32>
    %54 = math.tanh %53 : vector<8x32xf32>
    %55 = arith.mulf %50, %54 : vector<8x32xf32>
    %c8_26 = arith.constant 8 : index
    %c0_27 = arith.constant 0 : index
    %56 = vector.load %arg17[%c8_26, %c0_27] : memref<64x32xf32, #tpu.memory_space<vmem>>, vector<8x32xf32>
    tpu.vector_store %arg17[%c8_26, %c0_27], %55 {strides = array<i32>} : memref<64x32xf32, #tpu.memory_space<vmem>>, vector<8x32xf32>,
    %c16 = arith.constant 16 : index
    %c0_28 = arith.constant 0 : index
    %57 = vector.load %arg18[%c16, %c0_28] : memref<64x128xf32, #tpu.memory_space<vmem>>, vector<8x128xf32>
    %cst_29 = arith.constant dense<0.000000e+00> : vector<8x128xf32>
    %58 = tpu.matmul %55, %14, %cst_29 {dimension_numbers = #tpu.dot_dimension_numbers<[1], [0], [0], [1], [0, 0, 1, 1], [], []>} : vector<8x32xf32>, vector<32x128xf32>, vector<8x128xf32> -> vector<8x128xf32>
    %59 = arith.addf %57, %58 : vector<8x128xf32>
    %60 = arith.negf %59 : vector<8x128xf32>
    %61 = math.exp %60 : vector<8x128xf32>
    %cst_30 = arith.constant 1.000000e+00 : f32
    %62 = vector.broadcast %cst_30 : f32 to vector<8x128xf32>
    %63 = arith.addf %62, %61 : vector<8x128xf32>
    %64 = arith.divf %62, %63 : vector<8x128xf32>
    %65 = math.tanh %59 : vector<8x128xf32>
    %66 = vector.extract_strided_slice %64 {offsets = [0, 0], sizes = [8, 32], strides = [1, 1]} : vector<8x128xf32> to vector<8x32xf32>
    %67 = vector.extract_strided_slice %64 {offsets = [0, 32], sizes = [8, 32], strides = [1, 1]} : vector<8x128xf32> to vector<8x32xf32>
    %68 = vector.extract_strided_slice %65 {offsets = [0, 64], sizes = [8, 32], strides = [1, 1]} : vector<8x128xf32> to vector<8x32xf32>
    %69 = vector.extract_strided_slice %64 {offsets = [0, 96], sizes = [8, 32], strides = [1, 1]} : vector<8x128xf32> to vector<8x32xf32>
    %70 = arith.mulf %67, %53 : vector<8x32xf32>
    %71 = arith.mulf %66, %68 : vector<8x32xf32>
    %72 = arith.addf %70, %71 : vector<8x32xf32>
    %73 = math.tanh %72 : vector<8x32xf32>
    %74 = arith.mulf %69, %73 : vector<8x32xf32>
    %c16_31 = arith.constant 16 : index
    %c0_32 = arith.constant 0 : index
    %75 = vector.load %arg17[%c16_31, %c0_32] : memref<64x32xf32, #tpu.memory_space<vmem>>, vector<8x32xf32>
    tpu.vector_store %arg17[%c16_31, %c0_32], %74 {strides = array<i32>} : memref<64x32xf32, #tpu.memory_space<vmem>>, vector<8x32xf32>,
    %c24 = arith.constant 24 : index
    %c0_33 = arith.constant 0 : index
    %76 = vector.load %arg18[%c24, %c0_33] : memref<64x128xf32, #tpu.memory_space<vmem>>, vector<8x128xf32>
    %cst_34 = arith.constant dense<0.000000e+00> : vector<8x128xf32>
    %77 = tpu.matmul %74, %14, %cst_34 {dimension_numbers = #tpu.dot_dimension_numbers<[1], [0], [0], [1], [0, 0, 1, 1], [], []>} : vector<8x32xf32>, vector<32x128xf32>, vector<8x128xf32> -> vector<8x128xf32>
    %78 = arith.addf %76, %77 : vector<8x128xf32>
    %79 = arith.negf %78 : vector<8x128xf32>
    %80 = math.exp %79 : vector<8x128xf32>
    %cst_35 = arith.constant 1.000000e+00 : f32
    %81 = vector.broadcast %cst_35 : f32 to vector<8x128xf32>
    %82 = arith.addf %81, %80 : vector<8x128xf32>
    %83 = arith.divf %81, %82 : vector<8x128xf32>
    %84 = math.tanh %78 : vector<8x128xf32>
    %85 = vector.extract_strided_slice %83 {offsets = [0, 0], sizes = [8, 32], strides = [1, 1]} : vector<8x128xf32> to vector<8x32xf32>
    %86 = vector.extract_strided_slice %83 {offsets = [0, 32], sizes = [8, 32], strides = [1, 1]} : vector<8x128xf32> to vector<8x32xf32>
    %87 = vector.extract_strided_slice %84 {offsets = [0, 64], sizes = [8, 32], strides = [1, 1]} : vector<8x128xf32> to vector<8x32xf32>
    %88 = vector.extract_strided_slice %83 {offsets = [0, 96], sizes = [8, 32], strides = [1, 1]} : vector<8x128xf32> to vector<8x32xf32>
    %89 = arith.mulf %86, %72 : vector<8x32xf32>
    %90 = arith.mulf %85, %87 : vector<8x32xf32>
    %91 = arith.addf %89, %90 : vector<8x32xf32>
    %92 = math.tanh %91 : vector<8x32xf32>
    %93 = arith.mulf %88, %92 : vector<8x32xf32>
    %c24_36 = arith.constant 24 : index
    %c0_37 = arith.constant 0 : index
    %94 = vector.load %arg17[%c24_36, %c0_37] : memref<64x32xf32, #tpu.memory_space<vmem>>, vector<8x32xf32>
    tpu.vector_store %arg17[%c24_36, %c0_37], %93 {strides = array<i32>} : memref<64x32xf32, #tpu.memory_space<vmem>>, vector<8x32xf32>,
    %c32 = arith.constant 32 : index
    %c0_38 = arith.constant 0 : index
    %95 = vector.load %arg18[%c32, %c0_38] : memref<64x128xf32, #tpu.memory_space<vmem>>, vector<8x128xf32>
    %cst_39 = arith.constant dense<0.000000e+00> : vector<8x128xf32>
    %96 = tpu.matmul %93, %14, %cst_39 {dimension_numbers = #tpu.dot_dimension_numbers<[1], [0], [0], [1], [0, 0, 1, 1], [], []>} : vector<8x32xf32>, vector<32x128xf32>, vector<8x128xf32> -> vector<8x128xf32>
    %97 = arith.addf %95, %96 : vector<8x128xf32>
    %98 = arith.negf %97 : vector<8x128xf32>
    %99 = math.exp %98 : vector<8x128xf32>
    %cst_40 = arith.constant 1.000000e+00 : f32
    %100 = vector.broadcast %cst_40 : f32 to vector<8x128xf32>
    %101 = arith.addf %100, %99 : vector<8x128xf32>
    %102 = arith.divf %100, %101 : vector<8x128xf32>
    %103 = math.tanh %97 : vector<8x128xf32>
    %104 = vector.extract_strided_slice %102 {offsets = [0, 0], sizes = [8, 32], strides = [1, 1]} : vector<8x128xf32> to vector<8x32xf32>
    %105 = vector.extract_strided_slice %102 {offsets = [0, 32], sizes = [8, 32], strides = [1, 1]} : vector<8x128xf32> to vector<8x32xf32>
    %106 = vector.extract_strided_slice %103 {offsets = [0, 64], sizes = [8, 32], strides = [1, 1]} : vector<8x128xf32> to vector<8x32xf32>
    %107 = vector.extract_strided_slice %102 {offsets = [0, 96], sizes = [8, 32], strides = [1, 1]} : vector<8x128xf32> to vector<8x32xf32>
    %108 = arith.mulf %105, %91 : vector<8x32xf32>
    %109 = arith.mulf %104, %106 : vector<8x32xf32>
    %110 = arith.addf %108, %109 : vector<8x32xf32>
    %111 = math.tanh %110 : vector<8x32xf32>
    %112 = arith.mulf %107, %111 : vector<8x32xf32>
    %c32_41 = arith.constant 32 : index
    %c0_42 = arith.constant 0 : index
    %113 = vector.load %arg17[%c32_41, %c0_42] : memref<64x32xf32, #tpu.memory_space<vmem>>, vector<8x32xf32>
    tpu.vector_store %arg17[%c32_41, %c0_42], %112 {strides = array<i32>} : memref<64x32xf32, #tpu.memory_space<vmem>>, vector<8x32xf32>,
    %c40 = arith.constant 40 : index
    %c0_43 = arith.constant 0 : index
    %114 = vector.load %arg18[%c40, %c0_43] : memref<64x128xf32, #tpu.memory_space<vmem>>, vector<8x128xf32>
    %cst_44 = arith.constant dense<0.000000e+00> : vector<8x128xf32>
    %115 = tpu.matmul %112, %14, %cst_44 {dimension_numbers = #tpu.dot_dimension_numbers<[1], [0], [0], [1], [0, 0, 1, 1], [], []>} : vector<8x32xf32>, vector<32x128xf32>, vector<8x128xf32> -> vector<8x128xf32>
    %116 = arith.addf %114, %115 : vector<8x128xf32>
    %117 = arith.negf %116 : vector<8x128xf32>
    %118 = math.exp %117 : vector<8x128xf32>
    %cst_45 = arith.constant 1.000000e+00 : f32
    %119 = vector.broadcast %cst_45 : f32 to vector<8x128xf32>
    %120 = arith.addf %119, %118 : vector<8x128xf32>
    %121 = arith.divf %119, %120 : vector<8x128xf32>
    %122 = math.tanh %116 : vector<8x128xf32>
    %123 = vector.extract_strided_slice %121 {offsets = [0, 0], sizes = [8, 32], strides = [1, 1]} : vector<8x128xf32> to vector<8x32xf32>
    %124 = vector.extract_strided_slice %121 {offsets = [0, 32], sizes = [8, 32], strides = [1, 1]} : vector<8x128xf32> to vector<8x32xf32>
    %125 = vector.extract_strided_slice %122 {offsets = [0, 64], sizes = [8, 32], strides = [1, 1]} : vector<8x128xf32> to vector<8x32xf32>
    %126 = vector.extract_strided_slice %121 {offsets = [0, 96], sizes = [8, 32], strides = [1, 1]} : vector<8x128xf32> to vector<8x32xf32>
    %127 = arith.mulf %124, %110 : vector<8x32xf32>
    %128 = arith.mulf %123, %125 : vector<8x32xf32>
    %129 = arith.addf %127, %128 : vector<8x32xf32>
    %130 = math.tanh %129 : vector<8x32xf32>
    %131 = arith.mulf %126, %130 : vector<8x32xf32>
    %c40_46 = arith.constant 40 : index
    %c0_47 = arith.constant 0 : index
    %132 = vector.load %arg17[%c40_46, %c0_47] : memref<64x32xf32, #tpu.memory_space<vmem>>, vector<8x32xf32>
    tpu.vector_store %arg17[%c40_46, %c0_47], %131 {strides = array<i32>} : memref<64x32xf32, #tpu.memory_space<vmem>>, vector<8x32xf32>,
    %c48 = arith.constant 48 : index
    %c0_48 = arith.constant 0 : index
    %133 = vector.load %arg18[%c48, %c0_48] : memref<64x128xf32, #tpu.memory_space<vmem>>, vector<8x128xf32>
    %cst_49 = arith.constant dense<0.000000e+00> : vector<8x128xf32>
    %134 = tpu.matmul %131, %14, %cst_49 {dimension_numbers = #tpu.dot_dimension_numbers<[1], [0], [0], [1], [0, 0, 1, 1], [], []>} : vector<8x32xf32>, vector<32x128xf32>, vector<8x128xf32> -> vector<8x128xf32>
    %135 = arith.addf %133, %134 : vector<8x128xf32>
    %136 = arith.negf %135 : vector<8x128xf32>
    %137 = math.exp %136 : vector<8x128xf32>
    %cst_50 = arith.constant 1.000000e+00 : f32
    %138 = vector.broadcast %cst_50 : f32 to vector<8x128xf32>
    %139 = arith.addf %138, %137 : vector<8x128xf32>
    %140 = arith.divf %138, %139 : vector<8x128xf32>
    %141 = math.tanh %135 : vector<8x128xf32>
    %142 = vector.extract_strided_slice %140 {offsets = [0, 0], sizes = [8, 32], strides = [1, 1]} : vector<8x128xf32> to vector<8x32xf32>
    %143 = vector.extract_strided_slice %140 {offsets = [0, 32], sizes = [8, 32], strides = [1, 1]} : vector<8x128xf32> to vector<8x32xf32>
    %144 = vector.extract_strided_slice %141 {offsets = [0, 64], sizes = [8, 32], strides = [1, 1]} : vector<8x128xf32> to vector<8x32xf32>
    %145 = vector.extract_strided_slice %140 {offsets = [0, 96], sizes = [8, 32], strides = [1, 1]} : vector<8x128xf32> to vector<8x32xf32>
    %146 = arith.mulf %143, %129 : vector<8x32xf32>
    %147 = arith.mulf %142, %144 : vector<8x32xf32>
    %148 = arith.addf %146, %147 : vector<8x32xf32>
    %149 = math.tanh %148 : vector<8x32xf32>
    %150 = arith.mulf %145, %149 : vector<8x32xf32>
    %c48_51 = arith.constant 48 : index
    %c0_52 = arith.constant 0 : index
    %151 = vector.load %arg17[%c48_51, %c0_52] : memref<64x32xf32, #tpu.memory_space<vmem>>, vector<8x32xf32>
    tpu.vector_store %arg17[%c48_51, %c0_52], %150 {strides = array<i32>} : memref<64x32xf32, #tpu.memory_space<vmem>>, vector<8x32xf32>,
    %c56 = arith.constant 56 : index
    %c0_53 = arith.constant 0 : index
    %152 = vector.load %arg18[%c56, %c0_53] : memref<64x128xf32, #tpu.memory_space<vmem>>, vector<8x128xf32>
    %cst_54 = arith.constant dense<0.000000e+00> : vector<8x128xf32>
    %153 = tpu.matmul %150, %14, %cst_54 {dimension_numbers = #tpu.dot_dimension_numbers<[1], [0], [0], [1], [0, 0, 1, 1], [], []>} : vector<8x32xf32>, vector<32x128xf32>, vector<8x128xf32> -> vector<8x128xf32>
    %154 = arith.addf %152, %153 : vector<8x128xf32>
    %155 = arith.negf %154 : vector<8x128xf32>
    %156 = math.exp %155 : vector<8x128xf32>
    %cst_55 = arith.constant 1.000000e+00 : f32
    %157 = vector.broadcast %cst_55 : f32 to vector<8x128xf32>
    %158 = arith.addf %157, %156 : vector<8x128xf32>
    %159 = arith.divf %157, %158 : vector<8x128xf32>
    %160 = math.tanh %154 : vector<8x128xf32>
    %161 = vector.extract_strided_slice %159 {offsets = [0, 0], sizes = [8, 32], strides = [1, 1]} : vector<8x128xf32> to vector<8x32xf32>
    %162 = vector.extract_strided_slice %159 {offsets = [0, 32], sizes = [8, 32], strides = [1, 1]} : vector<8x128xf32> to vector<8x32xf32>
    %163 = vector.extract_strided_slice %160 {offsets = [0, 64], sizes = [8, 32], strides = [1, 1]} : vector<8x128xf32> to vector<8x32xf32>
    %164 = vector.extract_strided_slice %159 {offsets = [0, 96], sizes = [8, 32], strides = [1, 1]} : vector<8x128xf32> to vector<8x32xf32>
    %165 = arith.mulf %162, %148 : vector<8x32xf32>
    %166 = arith.mulf %161, %163 : vector<8x32xf32>
    %167 = arith.addf %165, %166 : vector<8x32xf32>
    %168 = math.tanh %167 : vector<8x32xf32>
    %169 = arith.mulf %164, %168 : vector<8x32xf32>
    %c56_56 = arith.constant 56 : index
    %c0_57 = arith.constant 0 : index
    %170 = vector.load %arg17[%c56_56, %c0_57] : memref<64x32xf32, #tpu.memory_space<vmem>>, vector<8x32xf32>
    tpu.vector_store %arg17[%c56_56, %c0_57], %169 {strides = array<i32>} : memref<64x32xf32, #tpu.memory_space<vmem>>, vector<8x32xf32>,
    %c0_58 = arith.constant 0 : index
    %c0_59 = arith.constant 0 : index
    %c0_60 = arith.constant 0 : index
    %171 = vector.load %arg15[%c0_58, %c0_59, %c0_60] : memref<2x8x32xf32, #tpu.memory_space<vmem>>, vector<1x8x32xf32>
    %172 = vector.shape_cast %171 : vector<1x8x32xf32> to vector<8x32xf32>
    %173 = vector.shape_cast %169 : vector<8x32xf32> to vector<1x8x32xf32>
    tpu.vector_store %arg15[%c0_58, %c0_59, %c0_60], %173 {strides = array<i32>} : memref<2x8x32xf32, #tpu.memory_space<vmem>>, vector<1x8x32xf32>,
    %c0_61 = arith.constant 0 : index
    %c0_62 = arith.constant 0 : index
    %c0_63 = arith.constant 0 : index
    %174 = vector.load %arg16[%c0_61, %c0_62, %c0_63] : memref<2x8x32xf32, #tpu.memory_space<vmem>>, vector<1x8x32xf32>
    %175 = vector.shape_cast %174 : vector<1x8x32xf32> to vector<8x32xf32>
    %176 = vector.shape_cast %167 : vector<8x32xf32> to vector<1x8x32xf32>
    tpu.vector_store %arg16[%c0_61, %c0_62, %c0_63], %176 {strides = array<i32>} : memref<2x8x32xf32, #tpu.memory_space<vmem>>, vector<1x8x32xf32>,
    %c0_64 = arith.constant 0 : index
    %c0_65 = arith.constant 0 : index
    %177 = vector.load %arg17[%c0_64, %c0_65] : memref<64x32xf32, #tpu.memory_space<vmem>>, vector<64x32xf32>
    %c0_66 = arith.constant 0 : index
    %c0_67 = arith.constant 0 : index
    %c0_68 = arith.constant 0 : index
    %178 = vector.load %arg5[%c0_66, %c0_67, %c0_68] : memref<1x32x128xf32, #tpu.memory_space<vmem>>, vector<1x32x128xf32>
    %179 = vector.shape_cast %178 : vector<1x32x128xf32> to vector<32x128xf32>
    %cst_69 = arith.constant dense<0.000000e+00> : vector<64x128xf32>
    %180 = tpu.matmul %177, %179, %cst_69 {dimension_numbers = #tpu.dot_dimension_numbers<[1], [0], [0], [1], [0, 0, 1, 1], [], []>} : vector<64x32xf32>, vector<32x128xf32>, vector<64x128xf32> -> vector<64x128xf32>
    %c0_70 = arith.constant 0 : index
    %c0_71 = arith.constant 0 : index
    %c0_72 = arith.constant 0 : index
    %181 = vector.load %arg7[%c0_70, %c0_71, %c0_72] : memref<1x1x128xf32, #tpu.memory_space<vmem>>, vector<1x1x128xf32>
    %182 = vector.shape_cast %181 : vector<1x1x128xf32> to vector<1x128xf32>
    %183 = vector.broadcast %182 : vector<1x128xf32> to vector<64x128xf32>
    %184 = arith.addf %180, %183 : vector<64x128xf32>
    %c0_73 = arith.constant 0 : index
    %c0_74 = arith.constant 0 : index
    %185 = vector.load %arg18[%c0_73, %c0_74] : memref<64x128xf32, #tpu.memory_space<vmem>>, vector<64x128xf32>
    tpu.vector_store %arg18[%c0_73, %c0_74], %184 {strides = array<i32>} : memref<64x128xf32, #tpu.memory_space<vmem>>, vector<64x128xf32>,
    %c1 = arith.constant 1 : index
    %c0_75 = arith.constant 0 : index
    %c0_76 = arith.constant 0 : index
    %186 = vector.load %arg6[%c1, %c0_75, %c0_76] : memref<2x32x128xf32, #tpu.memory_space<vmem>>, vector<1x32x128xf32>
    %187 = vector.shape_cast %186 : vector<1x32x128xf32> to vector<32x128xf32>
    %c1_77 = arith.constant 1 : index
    %c0_78 = arith.constant 0 : index
    %c0_79 = arith.constant 0 : index
    %188 = vector.load %arg15[%c1_77, %c0_78, %c0_79] : memref<2x8x32xf32, #tpu.memory_space<vmem>>, vector<1x8x32xf32>
    %189 = vector.shape_cast %188 : vector<1x8x32xf32> to vector<8x32xf32>
    %c1_80 = arith.constant 1 : index
    %c0_81 = arith.constant 0 : index
    %c0_82 = arith.constant 0 : index
    %190 = vector.load %arg16[%c1_80, %c0_81, %c0_82] : memref<2x8x32xf32, #tpu.memory_space<vmem>>, vector<1x8x32xf32>
    %191 = vector.shape_cast %190 : vector<1x8x32xf32> to vector<8x32xf32>
    %c0_83 = arith.constant 0 : index
    %c0_84 = arith.constant 0 : index
    %192 = vector.load %arg18[%c0_83, %c0_84] : memref<64x128xf32, #tpu.memory_space<vmem>>, vector<8x128xf32>
    %cst_85 = arith.constant dense<0.000000e+00> : vector<8x128xf32>
    %193 = tpu.matmul %189, %187, %cst_85 {dimension_numbers = #tpu.dot_dimension_numbers<[1], [0], [0], [1], [0, 0, 1, 1], [], []>} : vector<8x32xf32>, vector<32x128xf32>, vector<8x128xf32> -> vector<8x128xf32>
    %194 = arith.addf %192, %193 : vector<8x128xf32>
    %195 = arith.negf %194 : vector<8x128xf32>
    %196 = math.exp %195 : vector<8x128xf32>
    %cst_86 = arith.constant 1.000000e+00 : f32
    %197 = vector.broadcast %cst_86 : f32 to vector<8x128xf32>
    %198 = arith.addf %197, %196 : vector<8x128xf32>
    %199 = arith.divf %197, %198 : vector<8x128xf32>
    %200 = math.tanh %194 : vector<8x128xf32>
    %201 = vector.extract_strided_slice %199 {offsets = [0, 0], sizes = [8, 32], strides = [1, 1]} : vector<8x128xf32> to vector<8x32xf32>
    %202 = vector.extract_strided_slice %199 {offsets = [0, 32], sizes = [8, 32], strides = [1, 1]} : vector<8x128xf32> to vector<8x32xf32>
    %203 = vector.extract_strided_slice %200 {offsets = [0, 64], sizes = [8, 32], strides = [1, 1]} : vector<8x128xf32> to vector<8x32xf32>
    %204 = vector.extract_strided_slice %199 {offsets = [0, 96], sizes = [8, 32], strides = [1, 1]} : vector<8x128xf32> to vector<8x32xf32>
    %205 = arith.mulf %202, %191 : vector<8x32xf32>
    %206 = arith.mulf %201, %203 : vector<8x32xf32>
    %207 = arith.addf %205, %206 : vector<8x32xf32>
    %208 = math.tanh %207 : vector<8x32xf32>
    %209 = arith.mulf %204, %208 : vector<8x32xf32>
    %c0_87 = arith.constant 0 : index
    %c0_88 = arith.constant 0 : index
    %210 = vector.load %arg17[%c0_87, %c0_88] : memref<64x32xf32, #tpu.memory_space<vmem>>, vector<8x32xf32>
    tpu.vector_store %arg17[%c0_87, %c0_88], %209 {strides = array<i32>} : memref<64x32xf32, #tpu.memory_space<vmem>>, vector<8x32xf32>,
    %c8_89 = arith.constant 8 : index
    %c0_90 = arith.constant 0 : index
    %211 = vector.load %arg18[%c8_89, %c0_90] : memref<64x128xf32, #tpu.memory_space<vmem>>, vector<8x128xf32>
    %cst_91 = arith.constant dense<0.000000e+00> : vector<8x128xf32>
    %212 = tpu.matmul %209, %187, %cst_91 {dimension_numbers = #tpu.dot_dimension_numbers<[1], [0], [0], [1], [0, 0, 1, 1], [], []>} : vector<8x32xf32>, vector<32x128xf32>, vector<8x128xf32> -> vector<8x128xf32>
    %213 = arith.addf %211, %212 : vector<8x128xf32>
    %214 = arith.negf %213 : vector<8x128xf32>
    %215 = math.exp %214 : vector<8x128xf32>
    %cst_92 = arith.constant 1.000000e+00 : f32
    %216 = vector.broadcast %cst_92 : f32 to vector<8x128xf32>
    %217 = arith.addf %216, %215 : vector<8x128xf32>
    %218 = arith.divf %216, %217 : vector<8x128xf32>
    %219 = math.tanh %213 : vector<8x128xf32>
    %220 = vector.extract_strided_slice %218 {offsets = [0, 0], sizes = [8, 32], strides = [1, 1]} : vector<8x128xf32> to vector<8x32xf32>
    %221 = vector.extract_strided_slice %218 {offsets = [0, 32], sizes = [8, 32], strides = [1, 1]} : vector<8x128xf32> to vector<8x32xf32>
    %222 = vector.extract_strided_slice %219 {offsets = [0, 64], sizes = [8, 32], strides = [1, 1]} : vector<8x128xf32> to vector<8x32xf32>
    %223 = vector.extract_strided_slice %218 {offsets = [0, 96], sizes = [8, 32], strides = [1, 1]} : vector<8x128xf32> to vector<8x32xf32>
    %224 = arith.mulf %221, %207 : vector<8x32xf32>
    %225 = arith.mulf %220, %222 : vector<8x32xf32>
    %226 = arith.addf %224, %225 : vector<8x32xf32>
    %227 = math.tanh %226 : vector<8x32xf32>
    %228 = arith.mulf %223, %227 : vector<8x32xf32>
    %c8_93 = arith.constant 8 : index
    %c0_94 = arith.constant 0 : index
    %229 = vector.load %arg17[%c8_93, %c0_94] : memref<64x32xf32, #tpu.memory_space<vmem>>, vector<8x32xf32>
    tpu.vector_store %arg17[%c8_93, %c0_94], %228 {strides = array<i32>} : memref<64x32xf32, #tpu.memory_space<vmem>>, vector<8x32xf32>,
    %c16_95 = arith.constant 16 : index
    %c0_96 = arith.constant 0 : index
    %230 = vector.load %arg18[%c16_95, %c0_96] : memref<64x128xf32, #tpu.memory_space<vmem>>, vector<8x128xf32>
    %cst_97 = arith.constant dense<0.000000e+00> : vector<8x128xf32>
    %231 = tpu.matmul %228, %187, %cst_97 {dimension_numbers = #tpu.dot_dimension_numbers<[1], [0], [0], [1], [0, 0, 1, 1], [], []>} : vector<8x32xf32>, vector<32x128xf32>, vector<8x128xf32> -> vector<8x128xf32>
    %232 = arith.addf %230, %231 : vector<8x128xf32>
    %233 = arith.negf %232 : vector<8x128xf32>
    %234 = math.exp %233 : vector<8x128xf32>
    %cst_98 = arith.constant 1.000000e+00 : f32
    %235 = vector.broadcast %cst_98 : f32 to vector<8x128xf32>
    %236 = arith.addf %235, %234 : vector<8x128xf32>
    %237 = arith.divf %235, %236 : vector<8x128xf32>
    %238 = math.tanh %232 : vector<8x128xf32>
    %239 = vector.extract_strided_slice %237 {offsets = [0, 0], sizes = [8, 32], strides = [1, 1]} : vector<8x128xf32> to vector<8x32xf32>
    %240 = vector.extract_strided_slice %237 {offsets = [0, 32], sizes = [8, 32], strides = [1, 1]} : vector<8x128xf32> to vector<8x32xf32>
    %241 = vector.extract_strided_slice %238 {offsets = [0, 64], sizes = [8, 32], strides = [1, 1]} : vector<8x128xf32> to vector<8x32xf32>
    %242 = vector.extract_strided_slice %237 {offsets = [0, 96], sizes = [8, 32], strides = [1, 1]} : vector<8x128xf32> to vector<8x32xf32>
    %243 = arith.mulf %240, %226 : vector<8x32xf32>
    %244 = arith.mulf %239, %241 : vector<8x32xf32>
    %245 = arith.addf %243, %244 : vector<8x32xf32>
    %246 = math.tanh %245 : vector<8x32xf32>
    %247 = arith.mulf %242, %246 : vector<8x32xf32>
    %c16_99 = arith.constant 16 : index
    %c0_100 = arith.constant 0 : index
    %248 = vector.load %arg17[%c16_99, %c0_100] : memref<64x32xf32, #tpu.memory_space<vmem>>, vector<8x32xf32>
    tpu.vector_store %arg17[%c16_99, %c0_100], %247 {strides = array<i32>} : memref<64x32xf32, #tpu.memory_space<vmem>>, vector<8x32xf32>,
    %c24_101 = arith.constant 24 : index
    %c0_102 = arith.constant 0 : index
    %249 = vector.load %arg18[%c24_101, %c0_102] : memref<64x128xf32, #tpu.memory_space<vmem>>, vector<8x128xf32>
    %cst_103 = arith.constant dense<0.000000e+00> : vector<8x128xf32>
    %250 = tpu.matmul %247, %187, %cst_103 {dimension_numbers = #tpu.dot_dimension_numbers<[1], [0], [0], [1], [0, 0, 1, 1], [], []>} : vector<8x32xf32>, vector<32x128xf32>, vector<8x128xf32> -> vector<8x128xf32>
    %251 = arith.addf %249, %250 : vector<8x128xf32>
    %252 = arith.negf %251 : vector<8x128xf32>
    %253 = math.exp %252 : vector<8x128xf32>
    %cst_104 = arith.constant 1.000000e+00 : f32
    %254 = vector.broadcast %cst_104 : f32 to vector<8x128xf32>
    %255 = arith.addf %254, %253 : vector<8x128xf32>
    %256 = arith.divf %254, %255 : vector<8x128xf32>
    %257 = math.tanh %251 : vector<8x128xf32>
    %258 = vector.extract_strided_slice %256 {offsets = [0, 0], sizes = [8, 32], strides = [1, 1]} : vector<8x128xf32> to vector<8x32xf32>
    %259 = vector.extract_strided_slice %256 {offsets = [0, 32], sizes = [8, 32], strides = [1, 1]} : vector<8x128xf32> to vector<8x32xf32>
    %260 = vector.extract_strided_slice %257 {offsets = [0, 64], sizes = [8, 32], strides = [1, 1]} : vector<8x128xf32> to vector<8x32xf32>
    %261 = vector.extract_strided_slice %256 {offsets = [0, 96], sizes = [8, 32], strides = [1, 1]} : vector<8x128xf32> to vector<8x32xf32>
    %262 = arith.mulf %259, %245 : vector<8x32xf32>
    %263 = arith.mulf %258, %260 : vector<8x32xf32>
    %264 = arith.addf %262, %263 : vector<8x32xf32>
    %265 = math.tanh %264 : vector<8x32xf32>
    %266 = arith.mulf %261, %265 : vector<8x32xf32>
    %c24_105 = arith.constant 24 : index
    %c0_106 = arith.constant 0 : index
    %267 = vector.load %arg17[%c24_105, %c0_106] : memref<64x32xf32, #tpu.memory_space<vmem>>, vector<8x32xf32>
    tpu.vector_store %arg17[%c24_105, %c0_106], %266 {strides = array<i32>} : memref<64x32xf32, #tpu.memory_space<vmem>>, vector<8x32xf32>,
    %c32_107 = arith.constant 32 : index
    %c0_108 = arith.constant 0 : index
    %268 = vector.load %arg18[%c32_107, %c0_108] : memref<64x128xf32, #tpu.memory_space<vmem>>, vector<8x128xf32>
    %cst_109 = arith.constant dense<0.000000e+00> : vector<8x128xf32>
    %269 = tpu.matmul %266, %187, %cst_109 {dimension_numbers = #tpu.dot_dimension_numbers<[1], [0], [0], [1], [0, 0, 1, 1], [], []>} : vector<8x32xf32>, vector<32x128xf32>, vector<8x128xf32> -> vector<8x128xf32>
    %270 = arith.addf %268, %269 : vector<8x128xf32>
    %271 = arith.negf %270 : vector<8x128xf32>
    %272 = math.exp %271 : vector<8x128xf32>
    %cst_110 = arith.constant 1.000000e+00 : f32
    %273 = vector.broadcast %cst_110 : f32 to vector<8x128xf32>
    %274 = arith.addf %273, %272 : vector<8x128xf32>
    %275 = arith.divf %273, %274 : vector<8x128xf32>
    %276 = math.tanh %270 : vector<8x128xf32>
    %277 = vector.extract_strided_slice %275 {offsets = [0, 0], sizes = [8, 32], strides = [1, 1]} : vector<8x128xf32> to vector<8x32xf32>
    %278 = vector.extract_strided_slice %275 {offsets = [0, 32], sizes = [8, 32], strides = [1, 1]} : vector<8x128xf32> to vector<8x32xf32>
    %279 = vector.extract_strided_slice %276 {offsets = [0, 64], sizes = [8, 32], strides = [1, 1]} : vector<8x128xf32> to vector<8x32xf32>
    %280 = vector.extract_strided_slice %275 {offsets = [0, 96], sizes = [8, 32], strides = [1, 1]} : vector<8x128xf32> to vector<8x32xf32>
    %281 = arith.mulf %278, %264 : vector<8x32xf32>
    %282 = arith.mulf %277, %279 : vector<8x32xf32>
    %283 = arith.addf %281, %282 : vector<8x32xf32>
    %284 = math.tanh %283 : vector<8x32xf32>
    %285 = arith.mulf %280, %284 : vector<8x32xf32>
    %c32_111 = arith.constant 32 : index
    %c0_112 = arith.constant 0 : index
    %286 = vector.load %arg17[%c32_111, %c0_112] : memref<64x32xf32, #tpu.memory_space<vmem>>, vector<8x32xf32>
    tpu.vector_store %arg17[%c32_111, %c0_112], %285 {strides = array<i32>} : memref<64x32xf32, #tpu.memory_space<vmem>>, vector<8x32xf32>,
    %c40_113 = arith.constant 40 : index
    %c0_114 = arith.constant 0 : index
    %287 = vector.load %arg18[%c40_113, %c0_114] : memref<64x128xf32, #tpu.memory_space<vmem>>, vector<8x128xf32>
    %cst_115 = arith.constant dense<0.000000e+00> : vector<8x128xf32>
    %288 = tpu.matmul %285, %187, %cst_115 {dimension_numbers = #tpu.dot_dimension_numbers<[1], [0], [0], [1], [0, 0, 1, 1], [], []>} : vector<8x32xf32>, vector<32x128xf32>, vector<8x128xf32> -> vector<8x128xf32>
    %289 = arith.addf %287, %288 : vector<8x128xf32>
    %290 = arith.negf %289 : vector<8x128xf32>
    %291 = math.exp %290 : vector<8x128xf32>
    %cst_116 = arith.constant 1.000000e+00 : f32
    %292 = vector.broadcast %cst_116 : f32 to vector<8x128xf32>
    %293 = arith.addf %292, %291 : vector<8x128xf32>
    %294 = arith.divf %292, %293 : vector<8x128xf32>
    %295 = math.tanh %289 : vector<8x128xf32>
    %296 = vector.extract_strided_slice %294 {offsets = [0, 0], sizes = [8, 32], strides = [1, 1]} : vector<8x128xf32> to vector<8x32xf32>
    %297 = vector.extract_strided_slice %294 {offsets = [0, 32], sizes = [8, 32], strides = [1, 1]} : vector<8x128xf32> to vector<8x32xf32>
    %298 = vector.extract_strided_slice %295 {offsets = [0, 64], sizes = [8, 32], strides = [1, 1]} : vector<8x128xf32> to vector<8x32xf32>
    %299 = vector.extract_strided_slice %294 {offsets = [0, 96], sizes = [8, 32], strides = [1, 1]} : vector<8x128xf32> to vector<8x32xf32>
    %300 = arith.mulf %297, %283 : vector<8x32xf32>
    %301 = arith.mulf %296, %298 : vector<8x32xf32>
    %302 = arith.addf %300, %301 : vector<8x32xf32>
    %303 = math.tanh %302 : vector<8x32xf32>
    %304 = arith.mulf %299, %303 : vector<8x32xf32>
    %c40_117 = arith.constant 40 : index
    %c0_118 = arith.constant 0 : index
    %305 = vector.load %arg17[%c40_117, %c0_118] : memref<64x32xf32, #tpu.memory_space<vmem>>, vector<8x32xf32>
    tpu.vector_store %arg17[%c40_117, %c0_118], %304 {strides = array<i32>} : memref<64x32xf32, #tpu.memory_space<vmem>>, vector<8x32xf32>,
    %c48_119 = arith.constant 48 : index
    %c0_120 = arith.constant 0 : index
    %306 = vector.load %arg18[%c48_119, %c0_120] : memref<64x128xf32, #tpu.memory_space<vmem>>, vector<8x128xf32>
    %cst_121 = arith.constant dense<0.000000e+00> : vector<8x128xf32>
    %307 = tpu.matmul %304, %187, %cst_121 {dimension_numbers = #tpu.dot_dimension_numbers<[1], [0], [0], [1], [0, 0, 1, 1], [], []>} : vector<8x32xf32>, vector<32x128xf32>, vector<8x128xf32> -> vector<8x128xf32>
    %308 = arith.addf %306, %307 : vector<8x128xf32>
    %309 = arith.negf %308 : vector<8x128xf32>
    %310 = math.exp %309 : vector<8x128xf32>
    %cst_122 = arith.constant 1.000000e+00 : f32
    %311 = vector.broadcast %cst_122 : f32 to vector<8x128xf32>
    %312 = arith.addf %311, %310 : vector<8x128xf32>
    %313 = arith.divf %311, %312 : vector<8x128xf32>
    %314 = math.tanh %308 : vector<8x128xf32>
    %315 = vector.extract_strided_slice %313 {offsets = [0, 0], sizes = [8, 32], strides = [1, 1]} : vector<8x128xf32> to vector<8x32xf32>
    %316 = vector.extract_strided_slice %313 {offsets = [0, 32], sizes = [8, 32], strides = [1, 1]} : vector<8x128xf32> to vector<8x32xf32>
    %317 = vector.extract_strided_slice %314 {offsets = [0, 64], sizes = [8, 32], strides = [1, 1]} : vector<8x128xf32> to vector<8x32xf32>
    %318 = vector.extract_strided_slice %313 {offsets = [0, 96], sizes = [8, 32], strides = [1, 1]} : vector<8x128xf32> to vector<8x32xf32>
    %319 = arith.mulf %316, %302 : vector<8x32xf32>
    %320 = arith.mulf %315, %317 : vector<8x32xf32>
    %321 = arith.addf %319, %320 : vector<8x32xf32>
    %322 = math.tanh %321 : vector<8x32xf32>
    %323 = arith.mulf %318, %322 : vector<8x32xf32>
    %c48_123 = arith.constant 48 : index
    %c0_124 = arith.constant 0 : index
    %324 = vector.load %arg17[%c48_123, %c0_124] : memref<64x32xf32, #tpu.memory_space<vmem>>, vector<8x32xf32>
    tpu.vector_store %arg17[%c48_123, %c0_124], %323 {strides = array<i32>} : memref<64x32xf32, #tpu.memory_space<vmem>>, vector<8x32xf32>,
    %c56_125 = arith.constant 56 : index
    %c0_126 = arith.constant 0 : index
    %325 = vector.load %arg18[%c56_125, %c0_126] : memref<64x128xf32, #tpu.memory_space<vmem>>, vector<8x128xf32>
    %cst_127 = arith.constant dense<0.000000e+00> : vector<8x128xf32>
    %326 = tpu.matmul %323, %187, %cst_127 {dimension_numbers = #tpu.dot_dimension_numbers<[1], [0], [0], [1], [0, 0, 1, 1], [], []>} : vector<8x32xf32>, vector<32x128xf32>, vector<8x128xf32> -> vector<8x128xf32>
    %327 = arith.addf %325, %326 : vector<8x128xf32>
    %328 = arith.negf %327 : vector<8x128xf32>
    %329 = math.exp %328 : vector<8x128xf32>
    %cst_128 = arith.constant 1.000000e+00 : f32
    %330 = vector.broadcast %cst_128 : f32 to vector<8x128xf32>
    %331 = arith.addf %330, %329 : vector<8x128xf32>
    %332 = arith.divf %330, %331 : vector<8x128xf32>
    %333 = math.tanh %327 : vector<8x128xf32>
    %334 = vector.extract_strided_slice %332 {offsets = [0, 0], sizes = [8, 32], strides = [1, 1]} : vector<8x128xf32> to vector<8x32xf32>
    %335 = vector.extract_strided_slice %332 {offsets = [0, 32], sizes = [8, 32], strides = [1, 1]} : vector<8x128xf32> to vector<8x32xf32>
    %336 = vector.extract_strided_slice %333 {offsets = [0, 64], sizes = [8, 32], strides = [1, 1]} : vector<8x128xf32> to vector<8x32xf32>
    %337 = vector.extract_strided_slice %332 {offsets = [0, 96], sizes = [8, 32], strides = [1, 1]} : vector<8x128xf32> to vector<8x32xf32>
    %338 = arith.mulf %335, %321 : vector<8x32xf32>
    %339 = arith.mulf %334, %336 : vector<8x32xf32>
    %340 = arith.addf %338, %339 : vector<8x32xf32>
    %341 = math.tanh %340 : vector<8x32xf32>
    %342 = arith.mulf %337, %341 : vector<8x32xf32>
    %c56_129 = arith.constant 56 : index
    %c0_130 = arith.constant 0 : index
    %343 = vector.load %arg17[%c56_129, %c0_130] : memref<64x32xf32, #tpu.memory_space<vmem>>, vector<8x32xf32>
    tpu.vector_store %arg17[%c56_129, %c0_130], %342 {strides = array<i32>} : memref<64x32xf32, #tpu.memory_space<vmem>>, vector<8x32xf32>,
    %c1_131 = arith.constant 1 : index
    %c0_132 = arith.constant 0 : index
    %c0_133 = arith.constant 0 : index
    %344 = vector.load %arg15[%c1_131, %c0_132, %c0_133] : memref<2x8x32xf32, #tpu.memory_space<vmem>>, vector<1x8x32xf32>
    %345 = vector.shape_cast %344 : vector<1x8x32xf32> to vector<8x32xf32>
    %346 = vector.shape_cast %342 : vector<8x32xf32> to vector<1x8x32xf32>
    tpu.vector_store %arg15[%c1_131, %c0_132, %c0_133], %346 {strides = array<i32>} : memref<2x8x32xf32, #tpu.memory_space<vmem>>, vector<1x8x32xf32>,
    %c1_134 = arith.constant 1 : index
    %c0_135 = arith.constant 0 : index
    %c0_136 = arith.constant 0 : index
    %347 = vector.load %arg16[%c1_134, %c0_135, %c0_136] : memref<2x8x32xf32, #tpu.memory_space<vmem>>, vector<1x8x32xf32>
    %348 = vector.shape_cast %347 : vector<1x8x32xf32> to vector<8x32xf32>
    %349 = vector.shape_cast %340 : vector<8x32xf32> to vector<1x8x32xf32>
    tpu.vector_store %arg16[%c1_134, %c0_135, %c0_136], %349 {strides = array<i32>} : memref<2x8x32xf32, #tpu.memory_space<vmem>>, vector<1x8x32xf32>,
    %c0_137 = arith.constant 0 : index
    %c0_138 = arith.constant 0 : index
    %350 = vector.load %arg17[%c0_137, %c0_138] : memref<64x32xf32, #tpu.memory_space<vmem>>, vector<64x32xf32>
    %351 = tpu.transpose %350, [1, 0] : vector<64x32xf32> -> vector<32x64xf32>
    %c0_139 = arith.constant 0 : index
    %c0_140 = arith.constant 0 : index
    %352 = vector.load %arg8[%c0_139, %c0_140] : memref<32x1xf32, #tpu.memory_space<vmem>>, vector<32x1xf32>
    %353 = vector.broadcast %352 : vector<32x1xf32> to vector<32x64xf32>
    %354 = arith.mulf %353, %351 : vector<32x64xf32>
    %cst_141 = arith.constant dense<0.000000e+00> : vector<64xf32>
    %355 = vector.multi_reduction <add>, %354, %cst_141 [0] : vector<32x64xf32> to vector<64xf32>
    %356 = vector.shape_cast %355 : vector<64xf32> to vector<1x64xf32>
    %c0_142 = arith.constant 0 : index
    %c0_143 = arith.constant 0 : index
    %357 = vector.load %arg9[%c0_142, %c0_143] : memref<1x1xf32, #tpu.memory_space<vmem>>, vector<1x1xf32>
    %358 = vector.broadcast %357 : vector<1x1xf32> to vector<1x64xf32>
    %359 = arith.addf %356, %358 : vector<1x64xf32>
    %360 = vector.shape_cast %359 : vector<1x64xf32> to vector<1x1x64xf32>
    %c0_144 = arith.constant 0 : index
    %c0_145 = arith.constant 0 : index
    %c0_146 = arith.constant 0 : index
    %361 = vector.load %arg12[%c0_144, %c0_145, %c0_146] : memref<1x1x64xf32, #tpu.memory_space<vmem>>, vector<1x1x64xf32>
    tpu.vector_store %arg12[%c0_144, %c0_145, %c0_146], %360 {strides = array<i32>} : memref<1x1x64xf32, #tpu.memory_space<vmem>>, vector<1x1x64xf32>,
    %c0_i32_147 = arith.constant 0 : i32
    %362 = arith.cmpi eq, %arg1, %c0_i32_147 : i32
    %363 = arith.extui %362 : i1 to i32
    %c0_i32_148 = arith.constant 0 : i32
    %364 = arith.cmpi ne, %363, %c0_i32_148 : i32
    scf.if %364 {
      %c0_149 = arith.constant 0 : index
      %c0_150 = arith.constant 0 : index
      %c0_151 = arith.constant 0 : index
      %365 = vector.load %arg15[%c0_149, %c0_150, %c0_151] : memref<2x8x32xf32, #tpu.memory_space<vmem>>, vector<2x8x32xf32>
      %c0_152 = arith.constant 0 : index
      %c0_153 = arith.constant 0 : index
      %c0_154 = arith.constant 0 : index
      %366 = vector.load %arg13[%c0_152, %c0_153, %c0_154] : memref<2x8x32xf32, #tpu.memory_space<vmem>>, vector<2x8x32xf32>
      tpu.vector_store %arg13[%c0_152, %c0_153, %c0_154], %365 {strides = array<i32>} : memref<2x8x32xf32, #tpu.memory_space<vmem>>, vector<2x8x32xf32>,
      %c0_155 = arith.constant 0 : index
      %c0_156 = arith.constant 0 : index
      %c0_157 = arith.constant 0 : index
      %367 = vector.load %arg16[%c0_155, %c0_156, %c0_157] : memref<2x8x32xf32, #tpu.memory_space<vmem>>, vector<2x8x32xf32>
      %c0_158 = arith.constant 0 : index
      %c0_159 = arith.constant 0 : index
      %c0_160 = arith.constant 0 : index
      %368 = vector.load %arg14[%c0_158, %c0_159, %c0_160] : memref<2x8x32xf32, #tpu.memory_space<vmem>>, vector<2x8x32xf32>
      tpu.vector_store %arg14[%c0_158, %c0_159, %c0_160], %367 {strides = array<i32>} : memref<2x8x32xf32, #tpu.memory_space<vmem>>, vector<2x8x32xf32>,
    } else {
    }
    return
  }
  func.func @transform_0(%arg0: i32, %arg1: i32) -> (i32, i32, i32) {
    %c0_i32 = arith.constant 0 : i32
    %c0_i32_0 = arith.constant 0 : i32
    return %arg0, %arg1, %c0_i32 : i32, i32, i32
  }
  func.func @transform_1(%arg0: i32, %arg1: i32) -> (i32, i32) {
    %c0_i32 = arith.constant 0 : i32
    %c0_i32_0 = arith.constant 0 : i32
    %c0_i32_1 = arith.constant 0 : i32
    return %c0_i32, %c0_i32_0 : i32, i32
  }
  func.func @transform_2(%arg0: i32, %arg1: i32) -> (i32, i32) {
    %c0_i32 = arith.constant 0 : i32
    %c0_i32_0 = arith.constant 0 : i32
    %c0_i32_1 = arith.constant 0 : i32
    return %c0_i32, %c0_i32_0 : i32, i32
  }
  func.func @transform_3(%arg0: i32, %arg1: i32) -> (i32, i32, i32) {
    %c0_i32 = arith.constant 0 : i32
    %c0_i32_0 = arith.constant 0 : i32
    %c0_i32_1 = arith.constant 0 : i32
    %c0_i32_2 = arith.constant 0 : i32
    return %c0_i32, %c0_i32_0, %c0_i32_1 : i32, i32, i32
  }
  func.func @transform_4(%arg0: i32, %arg1: i32) -> (i32, i32, i32) {
    %c0_i32 = arith.constant 0 : i32
    %c0_i32_0 = arith.constant 0 : i32
    %c0_i32_1 = arith.constant 0 : i32
    %c0_i32_2 = arith.constant 0 : i32
    return %c0_i32, %c0_i32_0, %c0_i32_1 : i32, i32, i32
  }
  func.func @transform_5(%arg0: i32, %arg1: i32) -> (i32, i32, i32) {
    %c0_i32 = arith.constant 0 : i32
    %c0_i32_0 = arith.constant 0 : i32
    %c0_i32_1 = arith.constant 0 : i32
    %c0_i32_2 = arith.constant 0 : i32
    return %c0_i32, %c0_i32_0, %c0_i32_1 : i32, i32, i32
  }
  func.func @transform_6(%arg0: i32, %arg1: i32) -> (i32, i32) {
    %c0_i32 = arith.constant 0 : i32
    %c0_i32_0 = arith.constant 0 : i32
    %c0_i32_1 = arith.constant 0 : i32
    return %c0_i32, %c0_i32_0 : i32, i32
  }
  func.func @transform_7(%arg0: i32, %arg1: i32) -> (i32, i32) {
    %c0_i32 = arith.constant 0 : i32
    %c0_i32_0 = arith.constant 0 : i32
    %c0_i32_1 = arith.constant 0 : i32
    return %c0_i32, %c0_i32_0 : i32, i32
  }
  func.func @transform_8(%arg0: i32, %arg1: i32) -> (i32, i32, i32) {
    %c0_i32 = arith.constant 0 : i32
    %c0_i32_0 = arith.constant 0 : i32
    %c0_i32_1 = arith.constant 0 : i32
    return %c0_i32, %arg0, %c0_i32_0 : i32, i32, i32
  }
  func.func @transform_9(%arg0: i32, %arg1: i32) -> (i32, i32, i32) {
    %c0_i32 = arith.constant 0 : i32
    %c0_i32_0 = arith.constant 0 : i32
    %c0_i32_1 = arith.constant 0 : i32
    return %c0_i32, %arg0, %c0_i32_0 : i32, i32, i32
  }
  func.func @transform_10(%arg0: i32, %arg1: i32) -> (i32, i32, i32) {
    %c0_i32 = arith.constant 0 : i32
    %c0_i32_0 = arith.constant 0 : i32
    return %arg0, %c0_i32, %arg1 : i32, i32, i32
  }
  func.func @transform_11(%arg0: i32, %arg1: i32) -> (i32, i32, i32) {
    %c0_i32 = arith.constant 0 : i32
    %c0_i32_0 = arith.constant 0 : i32
    %c0_i32_1 = arith.constant 0 : i32
    return %c0_i32, %arg0, %c0_i32_0 : i32, i32, i32
  }
  func.func @transform_12(%arg0: i32, %arg1: i32) -> (i32, i32, i32) {
    %c0_i32 = arith.constant 0 : i32
    %c0_i32_0 = arith.constant 0 : i32
    %c0_i32_1 = arith.constant 0 : i32
    return %c0_i32, %arg0, %c0_i32_0 : i32, i32, i32
  }
}

</mosaic_0001>

<bundles_post_ra>
// kernel: my_l2lstm_forward.1
= control target key start
LH: loop header
LB: loop body
LE: loop exit
PB: predicated region body
PF: predicated region fallthrough
CT: control target
= control target key end

     0   :  { %vm46_vm0 = vcmask 261120   ;;  %v2675_v0 = vmov 0.0|0.0   ;;  %vm2676_vm1 = vmmov 0   ;;  %v2677_v4 = vmov 0.0   ;;  %s2680_s23 = smov 64   ;;  %s2681_s22 = smov 96   ;;  %s3143_s4 = inlined_call_operand.vmem [shape: f32[2,32,128], index: 4, kind: input, shape index: {}]   ;;  %s3144_s8 = inlined_call_operand.vmem [shape: f32[2,8,32], index: 8, kind: input, shape index: {}]   ;;  %s3145_s0 = inlined_call_operand.vmem [shape: f32[1,64,1], index: 0, kind: input, shape index: {}]   ;;  %s3146_s9 = inlined_call_operand.vmem [shape: f32[2,8,32], index: 9, kind: input, shape index: {}]   ;;  %s3147_s1 = inlined_call_operand.vmem [shape: f32[1,128], index: 1, kind: input, shape index: {}]   ;;  %s3148_s2 = inlined_call_operand.vmem [shape: f32[1,128], index: 2, kind: input, shape index: {}]   ;;  %s3149_s3 = inlined_call_operand.vmem [shape: f32[1,32,128], index: 3, kind: input, shape index: {}]   ;;  %s3150_s5 = inlined_call_operand.vmem [shape: f32[1,1,128], index: 5, kind: input, shape index: {}]   ;;  %s3151_s11 = inlined_call_operand.vmem [shape: f32[2,8,32], index: 11, kind: output, shape index: {1}]   ;;  %s3152_s6 = inlined_call_operand.vmem [shape: f32[32,1], index: 6, kind: input, shape index: {}]   ;;  %s3153_s7 = inlined_call_operand.<no memory space> [shape: f32[1,1], index: 7, kind: input, shape index: {}]   ;;  %s3154_s12 = inlined_call_operand.vmem [shape: f32[2,8,32], index: 12, kind: output, shape index: {2}]   ;;  %s3155_s10 = inlined_call_operand.vmem [shape: f32[1,1,64], index: 10, kind: output, shape index: {0}]  }
   0x1   :  { %2434 = vmatprep.subr.bf16.mxu0 %v2675_v0  ;;  %v139_v1 = vld [vmem:[%s3143_s4] sm:$0xff]  ;;  %v140_v2 = vld [vmem:[%s3143_s4 + $0x8] sm:$0xff]  ;;  %v141_v3 = vld [vmem:[%s3143_s4 + $0x10] sm:$0xff]  ;;  %2246 = vmatprep.mubr.msk.f32.mxu0 %vm2676_vm1, %v2677_v4  ;;  %v2678_v9 = vmov 0   ;;  %vm2049_vm2 = vcmask 523264   ;;  %vm2074_vm3 = vcmask 516096  }
   0x2   :  { %v2759_v5 = vpack.c.bf16 %v140_v2, %v139_v1  ;;  %v142_v6 = vld [vmem:[%s3143_s4 + $0x18] sm:$0xff]  ;;  %v44_v7 = vld [vmem:[%s3144_s8] sm:$0xff]  ;;  %v45_v8 = vld [vmem:[%s3144_s8 + $0x8] sm:$0xff]  ;;  %2545 = vset.pattern.permute.xlu0 %v2678_v9  ;;  %2440 = vmatprep.subr.bf16.mxu1 %v2675_v0  ;;  %s2679_s8 = smov 32  }
   0x3   :  { %47 = vst.msk [vmem:[#allocation2] sm:$0xff] %vm46_vm0, %v44_v7  ;;  %48 = vst.msk [vmem:[#allocation2 + $0x8] sm:$0xff] %vm46_vm0, %v45_v8  ;;  %v53_v10 = vld [vmem:[%s3145_s0] sm:$0xff]  ;;  %2257 = vmatprep.mubr.msk.f32.mxu1 %vm2676_vm1, %v2677_v4  ;;  %2546 = vset.pattern.permute.xlu1 %v2678_v9  ;;  %v2782_v12 = vpack.c.bf16 %v142_v6, %v141_v3  ;;  %v54_v35 = vld [vmem:[%s3145_s0 + $0x8] sm:$0xff] }
   0x4   :  { %v49_v11 = vld [vmem:[%s3146_s9] sm:$0xff]  ;;  %2436 = vmatpush3.bf16.msra.mxu0 %v2759_v5  ;;  %64 = vperm.xlu0 %2545, %v53_v10   ;;  %v55_v56 = vld [vmem:[%s3145_s0 + $0x10] sm:$0xff] }
   0x5   :  { %51 = vst.msk [vmem:[#allocation3] sm:$0xff] %vm46_vm0, %v49_v11  ;;  %2437 = vmatprep.subr.bf16.mxu0 %v2675_v0  ;;  %2442 = vmatpush3.bf16.msra.mxu1 %v2759_v5  ;;  %v2803_v15 = vld [vmem:[%s3147_s1] ss:$0 sm:$0xff] }
   0x6   :  { %2443 = vmatprep.subr.bf16.mxu1 %v2675_v0  ;;  %v2809_v18 = vld [vmem:[%s3148_s2] ss:$0 sm:$0xff] }
   0x8   :  { %2439 = vmatpush3.bf16.msra.mxu0 %v2782_v12 }
   0x9   :  { %2445 = vmatpush3.bf16.msra.mxu1 %v2782_v12  ;;  %2446 = vmatprep.subr.bf16.mxu0 %v2675_v0 }
   0xa   :  { %v143_v13 = vld [vmem:[#allocation2] sm:$0xff]  ;;  %2452 = vmatprep.subr.bf16.mxu1 %v2675_v0 }
   0xb   :  { %2247 = vmatmul.mubr.msk.f32.vlgmr.msra.gmra.mrb[0].mxu0 %vm46_vm0, %v143_v13 }
   0xc   :  { %v144_v14 = vld [vmem:[#allocation3] sm:$0xff]  ;;  %2448 = vmatpush3.bf16.msra.mxu0 %v2759_v5  ;;  %2268 = vmatprep.mubr.msk.f32.mxu0 %vm2676_vm1, %v2677_v4 }
   0xd   :  { %229 = vrot.lane.b32.xlu1 %v144_v14, %s2679_s8  ;;  %2449 = vmatprep.subr.bf16.mxu0 %v2675_v0 }
  0x10   :  { %2451 = vmatpush3.bf16.msra.mxu0 %v2782_v12 }
  0x11   :  { %2458 = vmatprep.subr.bf16.mxu0 %v2675_v0 }
  0x7f   :  { %v230_v30 = vpop.permute.xlu1 %229 }
  0x83   :  { %v65_v16 = vpop.permute.xlu0 %64 }
  0x84   :  { %v108_v17 = vmul.f32 %v2803_v15, %v65_v16 }
  0x86   :  { %v123_v19 = vadd.f32 %v2809_v18, %v108_v17 }
  0xde   :  { %v216_v20 = vpop.f32.mrb[0].mxu0 }
  0xdf   :  { %v220_v21 = vadd.f32 %v216_v20, %v123_v19  ;;  %v2248_v22 = vpop.f32.mrb[1].mxu0  ;;  %v56_v19 = vld [vmem:[%s3145_s0 + $0x18] sm:$0xff] }
  0xe1   :  { %2547 = vtanh.f32 %v220_v21  ;;  %v2102_v24 = vmul.f32 -1.442695, %v220_v21 }
  0xe3   :  { %2549 = vpow2.f32 %v2102_v24 }
  0xeb   :  { %v2548_v23 = vpop.eup %2547 }
  0xec   :  { %234 = vrot.lane.b32.xlu0 %v2548_v23, %s2680_s23 }
  0xed   :  { %v2550_v25 = vpop.eup %2549 }
  0xee   :  { %v224_v26 = vadd.f32 1.0, %v2550_v25 }
  0xf0   :  { %2551 = vrcp.f32 %v224_v26 }
  0xfa   :  { %v2552_v27 = vpop.eup %2551 }
  0xfb   :  { %v232_v31 = vmul.f32 %v2552_v27, %v230_v30 }
 0x15e   :  { %v235_v28 = vpop.permute.xlu0 %234 }
 0x15f   :  { %v237_v29 = vmul.f32 %v2552_v27, %v235_v28 }
 0x161   :  { %239 = vrot.lane.b32.xlu1 %v237_v29, %s2679_s8 }
 0x1d3   :  { %v240_v32 = vpop.permute.xlu1 %239 }
 0x1d4   :  { %v242_v33 = vadd.f32 %v240_v32, %v232_v31 }
 0x1d6   :  { %2553 = vtanh.f32 %v242_v33 }
 0x1e0   :  { %v2554_v34 = vpop.eup %2553 }
 0x1e1   :  { %245 = vrot.lane.b32.xlu0 %v2554_v34, %s2680_s23 }
 0x1e5   :  { %69 = vperm.xlu0 %2545, %v54_v35  }
 0x253   :  { %v246_v36 = vpop.permute.xlu0 %245 }
 0x254   :  { %v248_v37 = vmul.f32 %v2552_v27, %v246_v36 }
 0x256   :  { %250 = vrot.lane.b32.xlu1 %v248_v37, %s2679_s8 }
 0x264   :  { %v70_v39 = vpop.permute.xlu0 %69 }
 0x265   :  { %v109_v40 = vmul.f32 %v2803_v15, %v70_v39 }
 0x267   :  { %v124_v41 = vadd.f32 %v2809_v18, %v109_v40  ;;  %v57_v40 = vld [vmem:[%s3145_s0 + $0x20] sm:$0xff] }
 0x2c8   :  { %v251_v38 = vpop.permute.xlu1 %250 }
 0x2c9   :  { %253 = vst.msk [vmem:[#allocation4] sm:$0xff] %vm46_vm0, %v251_v38  ;;  %2258 = vmatmul.mubr.msk.f32.vlgmr.msra.gmra.mrb[0].mxu1 %vm46_vm0, %v251_v38 }
 0x2ca   :  { %2454 = vmatpush3.bf16.msra.mxu1 %v2759_v5  ;;  %2279 = vmatprep.mubr.msk.f32.mxu1 %vm2676_vm1, %v2677_v4 }
 0x2cb   :  { %2455 = vmatprep.subr.bf16.mxu1 %v2675_v0 }
 0x2ce   :  { %2457 = vmatpush3.bf16.msra.mxu1 %v2782_v12 }
 0x2cf   :  { %2464 = vmatprep.subr.bf16.mxu1 %v2675_v0 }
 0x39c   :  { %v323_v42 = vpop.f32.mrb[0].mxu1 }
 0x39d   :  { %v327_v43 = vadd.f32 %v323_v42, %v124_v41  ;;  %v2259_v44 = vpop.f32.mrb[1].mxu1 }
 0x39f   :  { %2555 = vtanh.f32 %v327_v43  ;;  %v2104_v46 = vmul.f32 -1.442695, %v327_v43 }
 0x3a1   :  { %2557 = vpow2.f32 %v2104_v46 }
 0x3a9   :  { %v2556_v45 = vpop.eup %2555 }
 0x3aa   :  { %337 = vrot.lane.b32.xlu1 %v2556_v45, %s2680_s23 }
 0x3ab   :  { %v2558_v47 = vpop.eup %2557 }
 0x3ac   :  { %v331_v48 = vadd.f32 1.0, %v2558_v47 }
 0x3ae   :  { %2559 = vrcp.f32 %v331_v48 }
 0x3b8   :  { %v2560_v49 = vpop.eup %2559 }
 0x3b9   :  { %v335_v52 = vmul.f32 %v2560_v49, %v242_v33 }
 0x41c   :  { %v338_v50 = vpop.permute.xlu1 %337 }
 0x41d   :  { %v340_v51 = vmul.f32 %v2560_v49, %v338_v50 }
 0x41f   :  { %342 = vrot.lane.b32.xlu0 %v340_v51, %s2679_s8 }
 0x491   :  { %v343_v53 = vpop.permute.xlu0 %342 }
 0x492   :  { %v345_v54 = vadd.f32 %v343_v53, %v335_v52 }
 0x494   :  { %2561 = vtanh.f32 %v345_v54 }
 0x49e   :  { %v2562_v55 = vpop.eup %2561 }
 0x49f   :  { %348 = vrot.lane.b32.xlu1 %v2562_v55, %s2680_s23 }
 0x4a3   :  { %74 = vperm.xlu1 %2546, %v55_v56  }
 0x511   :  { %v349_v57 = vpop.permute.xlu1 %348 }
 0x512   :  { %v351_v58 = vmul.f32 %v2560_v49, %v349_v57 }
 0x514   :  { %353 = vrot.lane.b32.xlu0 %v351_v58, %s2679_s8 }
 0x522   :  { %v75_v60 = vpop.permute.xlu1 %74 }
 0x523   :  { %v110_v61 = vmul.f32 %v2803_v15, %v75_v60 }
 0x525   :  { %v125_v62 = vadd.f32 %v2809_v18, %v110_v61  ;;  %v58_v61 = vld [vmem:[%s3145_s0 + $0x28] sm:$0xff] }
 0x586   :  { %v354_v59 = vpop.permute.xlu0 %353 }
 0x587   :  { %356 = vst.msk [vmem:[#allocation4 + $0x8] sm:$0xff] %vm46_vm0, %v354_v59  ;;  %2269 = vmatmul.mubr.msk.f32.vlgmr.msra.gmra.mrb[2].mxu0 %vm46_vm0, %v354_v59 }
 0x588   :  { %2460 = vmatpush3.bf16.msra.mxu0 %v2759_v5  ;;  %2290 = vmatprep.mubr.msk.f32.mxu0 %vm2676_vm1, %v2677_v4 }
 0x589   :  { %2461 = vmatprep.subr.bf16.mxu0 %v2675_v0 }
 0x58c   :  { %2463 = vmatpush3.bf16.msra.mxu0 %v2782_v12 }
 0x58d   :  { %2470 = vmatprep.subr.bf16.mxu0 %v2675_v0 }
 0x65a   :  { %v426_v63 = vpop.f32.mrb[2].mxu0 }
 0x65b   :  { %v430_v1 = vadd.f32 %v426_v63, %v125_v62  ;;  %v2270_v2 = vpop.f32.mrb[3].mxu0 }
 0x65d   :  { %2563 = vtanh.f32 %v430_v1  ;;  %v2106_v6 = vmul.f32 -1.442695, %v430_v1 }
 0x65f   :  { %2565 = vpow2.f32 %v2106_v6 }
 0x667   :  { %v2564_v3 = vpop.eup %2563 }
 0x668   :  { %440 = vrot.lane.b32.xlu0 %v2564_v3, %s2680_s23 }
 0x669   :  { %v2566_v7 = vpop.eup %2565 }
 0x66a   :  { %v434_v8 = vadd.f32 1.0, %v2566_v7 }
 0x66c   :  { %2567 = vrcp.f32 %v434_v8 }
 0x676   :  { %v2568_v9 = vpop.eup %2567 }
 0x677   :  { %v438_v13 = vmul.f32 %v2568_v9, %v345_v54 }
 0x6da   :  { %v441_v10 = vpop.permute.xlu0 %440 }
 0x6db   :  { %v443_v11 = vmul.f32 %v2568_v9, %v441_v10 }
 0x6dd   :  { %445 = vrot.lane.b32.xlu1 %v443_v11, %s2679_s8 }
 0x74f   :  { %v446_v14 = vpop.permute.xlu1 %445 }
 0x750   :  { %v448_v16 = vadd.f32 %v446_v14, %v438_v13 }
 0x752   :  { %2569 = vtanh.f32 %v448_v16 }
 0x75c   :  { %v2570_v17 = vpop.eup %2569 }
 0x75d   :  { %451 = vrot.lane.b32.xlu0 %v2570_v17, %s2680_s23 }
 0x761   :  { %79 = vperm.xlu0 %2545, %v56_v19  }
 0x7cf   :  { %v452_v20 = vpop.permute.xlu0 %451 }
 0x7d0   :  { %v454_v21 = vmul.f32 %v2568_v9, %v452_v20 }
 0x7d2   :  { %456 = vrot.lane.b32.xlu1 %v454_v21, %s2679_s8 }
 0x7e0   :  { %v80_v23 = vpop.permute.xlu0 %79 }
 0x7e1   :  { %v111_v24 = vmul.f32 %v2803_v15, %v80_v23  ;;  %v989_v23 = vld [vmem:[%s3149_s3] sm:$0xff] }
 0x7e3   :  { %v126_v25 = vadd.f32 %v2809_v18, %v111_v24  ;;  %v990_v24 = vld [vmem:[%s3149_s3 + $0x8] sm:$0xff] }
 0x844   :  { %v457_v22 = vpop.permute.xlu1 %456 }
 0x845   :  { %459 = vst.msk [vmem:[#allocation4 + $0x10] sm:$0xff] %vm46_vm0, %v457_v22  ;;  %2280 = vmatmul.mubr.msk.f32.vlgmr.msra.gmra.mrb[2].mxu1 %vm46_vm0, %v457_v22  ;;  %v59_v22 = vld [vmem:[%s3145_s0 + $0x30] sm:$0xff] }
 0x846   :  { %2466 = vmatpush3.bf16.msra.mxu1 %v2759_v5  ;;  %2301 = vmatprep.mubr.msk.f32.mxu1 %vm2676_vm1, %v2677_v4 }
 0x847   :  { %2467 = vmatprep.subr.bf16.mxu1 %v2675_v0 }
 0x84a   :  { %2469 = vmatpush3.bf16.msra.mxu1 %v2782_v12 }
 0x84b   :  { %2476 = vmatprep.subr.bf16.mxu1 %v2675_v0 }
 0x918   :  { %v529_v26 = vpop.f32.mrb[2].mxu1 }
 0x919   :  { %v533_v27 = vadd.f32 %v529_v26, %v126_v25  ;;  %v2281_v28 = vpop.f32.mrb[3].mxu1  ;;  %v2482_v25 = vpack.c.bf16 %v990_v24, %v989_v23 }
 0x91a   :  { %v991_v28 = vld [vmem:[%s3149_s3 + $0x10] sm:$0xff] }
 0x91b   :  { %2571 = vtanh.f32 %v533_v27  ;;  %v2108_v30 = vmul.f32 -1.442695, %v533_v27 }
 0x91d   :  { %2573 = vpow2.f32 %v2108_v30 }
 0x925   :  { %v2572_v29 = vpop.eup %2571 }
 0x926   :  { %543 = vrot.lane.b32.xlu1 %v2572_v29, %s2680_s23  ;;  %v992_v29 = vld [vmem:[%s3149_s3 + $0x18] sm:$0xff] }
 0x927   :  { %v2574_v31 = vpop.eup %2573  ;;  %v2486_v30 = vpack.c.bf16 %v992_v29, %v991_v28 }
 0x928   :  { %v537_v32 = vadd.f32 1.0, %v2574_v31 }
 0x92a   :  { %2575 = vrcp.f32 %v537_v32  ;;  %v981_v32 = vld [vmem:[#allocation4] sm:$0xff] }
 0x934   :  { %v2576_v33 = vpop.eup %2575 }
 0x935   :  { %v541_v36 = vmul.f32 %v2576_v33, %v448_v16 }
 0x998   :  { %v544_v34 = vpop.permute.xlu1 %543 }
 0x999   :  { %v546_v35 = vmul.f32 %v2576_v33, %v544_v34  ;;  %v983_v34 = vld [vmem:[#allocation4 + $0x10] sm:$0xff] }
 0x99b   :  { %548 = vrot.lane.b32.xlu0 %v546_v35, %s2679_s8 }
 0xa0d   :  { %v549_v37 = vpop.permute.xlu0 %548 }
 0xa0e   :  { %v551_v38 = vadd.f32 %v549_v37, %v541_v36 }
 0xa10   :  { %2577 = vtanh.f32 %v551_v38 }
 0xa1a   :  { %v2578_v39 = vpop.eup %2577 }
 0xa1b   :  { %554 = vrot.lane.b32.xlu1 %v2578_v39, %s2680_s23 }
 0xa1f   :  { %84 = vperm.xlu1 %2546, %v57_v40  }
 0xa8d   :  { %v555_v41 = vpop.permute.xlu1 %554 }
 0xa8e   :  { %v557_v42 = vmul.f32 %v2576_v33, %v555_v41  ;;  %v982_v33 = vld [vmem:[#allocation4 + $0x8] sm:$0xff] }
 0xa90   :  { %559 = vrot.lane.b32.xlu0 %v557_v42, %s2679_s8 }
 0xa9e   :  { %v85_v44 = vpop.permute.xlu1 %84 }
 0xa9f   :  { %v112_v45 = vmul.f32 %v2803_v15, %v85_v44 }
 0xaa1   :  { %v127_v46 = vadd.f32 %v2809_v18, %v112_v45 }
 0xb02   :  { %v560_v43 = vpop.permute.xlu0 %559 }
 0xb03   :  { %562 = vst.msk [vmem:[#allocation4 + $0x18] sm:$0xff] %vm46_vm0, %v560_v43  ;;  %2291 = vmatmul.mubr.msk.f32.vlgmr.msra.gmra.mrb[4].mxu0 %vm46_vm0, %v560_v43 }
 0xb04   :  { %2472 = vmatpush3.bf16.msra.mxu0 %v2759_v5  ;;  %2312 = vmatprep.mubr.msk.f32.mxu0 %vm2676_vm1, %v2677_v4 }
 0xb05   :  { %2473 = vmatprep.subr.bf16.mxu0 %v2675_v0 }
 0xb08   :  { %2475 = vmatpush3.bf16.msra.mxu0 %v2782_v12 }
 0xb09   :  { %2483 = vmatprep.subr.bf16.mxu0 %v2482_v25 }
 0xb0a   :  { %v984_v35 = vld [vmem:[#allocation4 + $0x18] sm:$0xff] }
 0xbd6   :  { %v632_v47 = vpop.f32.mrb[4].mxu0 }
 0xbd7   :  { %v636_v48 = vadd.f32 %v632_v47, %v127_v46  ;;  %v2292_v49 = vpop.f32.mrb[5].mxu0 }
 0xbd9   :  { %2579 = vtanh.f32 %v636_v48  ;;  %v2110_v51 = vmul.f32 -1.442695, %v636_v48 }
 0xbdb   :  { %2581 = vpow2.f32 %v2110_v51 }
 0xbe3   :  { %v2580_v50 = vpop.eup %2579 }
 0xbe4   :  { %646 = vrot.lane.b32.xlu0 %v2580_v50, %s2680_s23 }
 0xbe5   :  { %v2582_v52 = vpop.eup %2581 }
 0xbe6   :  { %v640_v53 = vadd.f32 1.0, %v2582_v52 }
 0xbe8   :  { %2583 = vrcp.f32 %v640_v53 }
 0xbf2   :  { %v2584_v54 = vpop.eup %2583 }
 0xbf3   :  { %v644_v57 = vmul.f32 %v2584_v54, %v551_v38 }
 0xc56   :  { %v647_v55 = vpop.permute.xlu0 %646 }
 0xc57   :  { %v649_v56 = vmul.f32 %v2584_v54, %v647_v55 }
 0xc59   :  { %651 = vrot.lane.b32.xlu1 %v649_v56, %s2679_s8 }
 0xccb   :  { %v652_v58 = vpop.permute.xlu1 %651 }
 0xccc   :  { %v654_v59 = vadd.f32 %v652_v58, %v644_v57 }
 0xcce   :  { %2585 = vtanh.f32 %v654_v59 }
 0xcd8   :  { %v2586_v60 = vpop.eup %2585 }
 0xcd9   :  { %657 = vrot.lane.b32.xlu0 %v2586_v60, %s2680_s23 }
 0xcdd   :  { %89 = vperm.xlu0 %2545, %v58_v61   ;;  %v2126_v61 = vld [vmem:[%s3143_s4 + $0x20] sm:$0xff] }
 0xd4b   :  { %v658_v62 = vpop.permute.xlu0 %657 }
 0xd4c   :  { %v660_v63 = vmul.f32 %v2584_v54, %v658_v62  ;;  %v2127_v62 = vld [vmem:[%s3143_s4 + $0x28] sm:$0xff] }
 0xd4e   :  { %662 = vrot.lane.b32.xlu1 %v660_v63, %s2679_s8  ;;  %v2948_v63 = vpack.c.bf16 %v2127_v62, %v2126_v61 }
 0xd5c   :  { %v90_v2 = vpop.permute.xlu0 %89 }
 0xd5d   :  { %v113_v3 = vmul.f32 %v2803_v15, %v90_v2  ;;  %v2129_v2 = vld [vmem:[%s3143_s4 + $0x38] sm:$0xff] }
 0xd5f   :  { %v128_v6 = vadd.f32 %v2809_v18, %v113_v3 }
 0xdc0   :  { %v663_v1 = vpop.permute.xlu1 %662 }
 0xdc1   :  { %665 = vst.msk [vmem:[#allocation4 + $0x20] sm:$0xff] %vm46_vm0, %v663_v1  ;;  %2302 = vmatmul.mubr.msk.f32.vlgmr.msra.gmra.mrb[4].mxu1 %vm46_vm0, %v663_v1  ;;  %v2128_v1 = vld [vmem:[%s3143_s4 + $0x30] sm:$0xff] }
 0xdc2   :  { %2478 = vmatpush3.bf16.msra.mxu1 %v2759_v5  ;;  %2323 = vmatprep.mubr.msk.f32.mxu1 %vm2676_vm1, %v2677_v4  ;;  %v2958_v3 = vpack.c.bf16 %v2129_v2, %v2128_v1 }
 0xdc3   :  { %2479 = vmatprep.subr.bf16.mxu1 %v2675_v0 }
 0xdc6   :  { %2481 = vmatpush3.bf16.msra.mxu1 %v2782_v12 }
 0xdc7   :  { %2490 = vmatprep.subr.bf16.mxu1 %v2675_v0 }
 0xdc8   :  { %v985_v36 = vld [vmem:[#allocation4 + $0x20] sm:$0xff] }
 0xe94   :  { %v735_v7 = vpop.f32.mrb[4].mxu1 }
 0xe95   :  { %v739_v8 = vadd.f32 %v735_v7, %v128_v6  ;;  %v2303_v9 = vpop.f32.mrb[5].mxu1  ;;  %v50_v6 = vld [vmem:[%s3146_s9 + $0x8] sm:$0xff] }
 0xe96   :  { %52 = vst.msk [vmem:[#allocation3 + $0x8] sm:$0xff] %vm46_vm0, %v50_v6 }
 0xe97   :  { %2587 = vtanh.f32 %v739_v8  ;;  %v2112_v5 = vmul.f32 -1.442695, %v739_v8 }
 0xe99   :  { %2589 = vpow2.f32 %v2112_v5  ;;  %v1143_v5 = vld [vmem:[#allocation2 + $0x8] sm:$0xff] }
 0xe9d   :  { %v1145_v9 = vld [vmem:[#allocation3 + $0x8] sm:$0xff] }
 0xea1   :  { %v2588_v10 = vpop.eup %2587 }
 0xea2   :  { %749 = vrot.lane.b32.xlu1 %v2588_v10, %s2680_s23 }
 0xea3   :  { %v2590_v11 = vpop.eup %2589 }
 0xea4   :  { %v743_v13 = vadd.f32 1.0, %v2590_v11 }
 0xea6   :  { %2591 = vrcp.f32 %v743_v13 }
 0xeb0   :  { %v2592_v12 = vpop.eup %2591 }
 0xeb1   :  { %v747_v17 = vmul.f32 %v2592_v12, %v654_v59 }
 0xf14   :  { %v750_v14 = vpop.permute.xlu1 %749 }
 0xf15   :  { %v752_v16 = vmul.f32 %v2592_v12, %v750_v14  ;;  %v2987_v14 = vld [vmem:[%s3150_s5] ss:$0 sm:$0xff] }
 0xf17   :  { %754 = vrot.lane.b32.xlu0 %v752_v16, %s2679_s8 }
 0xf89   :  { %v755_v19 = vpop.permute.xlu0 %754 }
 0xf8a   :  { %v757_v20 = vadd.f32 %v755_v19, %v747_v17 }
 0xf8c   :  { %2593 = vtanh.f32 %v757_v20 }
 0xf96   :  { %v2594_v21 = vpop.eup %2593 }
 0xf97   :  { %760 = vrot.lane.b32.xlu1 %v2594_v21, %s2680_s23 }
 0xf9b   :  { %94 = vperm.xlu1 %2546, %v59_v22  }
0x1009   :  { %v761_v26 = vpop.permute.xlu1 %760 }
0x100a   :  { %v763_v27 = vmul.f32 %v2592_v12, %v761_v26 }
0x100c   :  { %765 = vrot.lane.b32.xlu0 %v763_v27, %s2679_s8 }
0x101a   :  { %v95_v38 = vpop.permute.xlu1 %94 }
0x101b   :  { %v114_v39 = vmul.f32 %v2803_v15, %v95_v38 }
0x101d   :  { %v129_v40 = vadd.f32 %v2809_v18, %v114_v39 }
0x107e   :  { %v766_v31 = vpop.permute.xlu0 %765 }
0x107f   :  { %768 = vst.msk [vmem:[#allocation4 + $0x28] sm:$0xff] %vm46_vm0, %v766_v31  ;;  %2313 = vmatmul.mubr.msk.f32.vlgmr.msra.gmra.mrb[6].mxu0 %vm46_vm0, %v766_v31 }
0x1080   :  { %2485 = vmatpush3.bf16.msra.mxu0 %v2482_v25  ;;  %2334 = vmatprep.mubr.msk.f32.mxu0 %vm46_vm0, %v981_v32 }
0x1081   :  { %2487 = vmatprep.subr.bf16.mxu0 %v2486_v30 }
0x1084   :  { %2489 = vmatpush3.bf16.msra.mxu0 %v2486_v30 }
0x1085   :  { %2502 = vmatprep.subr.bf16.mxu0 %v2675_v0 }
0x1086   :  { %v986_v37 = vld [vmem:[#allocation4 + $0x28] sm:$0xff] }
0x1087   :  { %2335 = vmatmul.mubr.msk.f32.vlgmr.msra.gmra.mrb[8].mxu0 %vm46_vm0, %v982_v33  ;;  %v60_v33 = vld [vmem:[%s3145_s0 + $0x38] sm:$0xff] }
0x1088   :  { %2337 = vmatprep.mubr.msk.f32.mxu0 %vm46_vm0, %v983_v34  ;;  %2504 = vmatpush3.bf16.msra.mxu0 %v2948_v63 }
0x1089   :  { %2505 = vmatprep.subr.bf16.mxu0 %v2675_v0 }
0x108b   :  { %2338 = vmatmul.mubr.msk.f32.gmra.mrb[10].mxu0 %vm46_vm0, %v984_v35 }
0x108c   :  { %2340 = vmatprep.mubr.msk.f32.mxu0 %vm46_vm0, %v985_v36  ;;  %2507 = vmatpush3.bf16.msra.mxu0 %v2958_v3 }
0x108d   :  { %2514 = vmatprep.subr.bf16.mxu0 %v2675_v0 }
0x108f   :  { %2341 = vmatmul.mubr.msk.f32.gmra.mrb[12].mxu0 %vm46_vm0, %v986_v37 }
0x1152   :  { %v838_v41 = vpop.f32.mrb[6].mxu0 }
0x1153   :  { %v842_v42 = vadd.f32 %v838_v41, %v129_v40  ;;  %v2314_v43 = vpop.f32.mrb[7].mxu0 }
0x1155   :  { %2595 = vtanh.f32 %v842_v42  ;;  %v2114_v51 = vmul.f32 -1.442695, %v842_v42 }
0x1157   :  { %2597 = vpow2.f32 %v2114_v51 }
0x115a   :  { %v2926_v44 = vpop.f32.mrb[8].mxu0 }
0x115b   :  { %v1090_v45 = vpop.f32.mrb[9].mxu0 }
0x115c   :  { %v1091_v16 = vadd.f32 %v2987_v14, %v1090_v45 }
0x115e   :  { %v2928_v46 = vpop.f32.mrb[10].mxu0 }
0x115f   :  { %v2596_v47 = vpop.eup %2595  ;;  %v2930_v48 = vpop.f32.mrb[11].mxu0 }
0x1160   :  { %852 = vrot.lane.b32.xlu0 %v2596_v47, %s2680_s23 }
0x1161   :  { %v2598_v52 = vpop.eup %2597 }
0x1162   :  { %v2933_v49 = vpop.f32.mrb[12].mxu0  ;;  %v846_v53 = vadd.f32 1.0, %v2598_v52 }
0x1163   :  { %v2935_v50 = vpop.f32.mrb[13].mxu0 }
0x1164   :  { %2599 = vrcp.f32 %v846_v53 }
0x116e   :  { %v2600_v54 = vpop.eup %2599 }
0x116f   :  { %v850_v57 = vmul.f32 %v2600_v54, %v757_v20 }
0x11d2   :  { %v853_v55 = vpop.permute.xlu0 %852 }
0x11d3   :  { %v855_v56 = vmul.f32 %v2600_v54, %v853_v55  ;;  %v1096_v55 = vadd.f32 %v2926_v44, %v2987_v14 }
0x11d5   :  { %857 = vrot.lane.b32.xlu1 %v855_v56, %s2679_s8 }
0x1247   :  { %v858_v58 = vpop.permute.xlu1 %857 }
0x1248   :  { %v2938_v59 = vadd.f32 %v858_v58, %v850_v57 }
0x124a   :  { %2601 = vtanh.f32 %v2938_v59 }
0x1254   :  { %v2602_v60 = vpop.eup %2601 }
0x1255   :  { %863 = vrot.lane.b32.xlu0 %v2602_v60, %s2680_s23 }
0x12c7   :  { %v864_v7 = vpop.permute.xlu0 %863 }
0x12c8   :  { %v866_v8 = vmul.f32 %v2600_v54, %v864_v7 }
0x12ca   :  { %868 = vrot.lane.b32.xlu1 %v866_v8, %s2679_s8 }
0x12ce   :  { %1229 = vrot.lane.b32.xlu1 %v1145_v9, %s2679_s8 }
0x133c   :  { %v869_v10 = vpop.permute.xlu1 %868 }
0x133d   :  { %871 = vst.msk [vmem:[#allocation4 + $0x30] sm:$0xff] %vm46_vm0, %v869_v10  ;;  %2324 = vmatmul.mubr.msk.f32.vlgmr.msra.gmra.mrb[6].mxu1 %vm46_vm0, %v869_v10 }
0x133e   :  { %2492 = vmatpush3.bf16.msra.mxu1 %v2948_v63  ;;  %2354 = vmatprep.mubr.msk.f32.mxu1 %vm2676_vm1, %v2677_v4 }
0x133f   :  { %2493 = vmatprep.subr.bf16.mxu1 %v2675_v0 }
0x1340   :  { %v1230_v28 = vpop.permute.xlu1 %1229 }
0x1342   :  { %2495 = vmatpush3.bf16.msra.mxu1 %v2958_v3 }
0x1343   :  { %2496 = vmatprep.subr.bf16.mxu1 %v2675_v0 }
0x1344   :  { %v987_v11 = vld [vmem:[#allocation4 + $0x30] sm:$0xff] }
0x1345   :  { %2355 = vmatmul.mubr.msk.f32.vlgmr.msra.gmra.mrb[8].mxu1 %vm46_vm0, %v1143_v5  ;;  %2343 = vmatprep.mubr.msk.f32.mxu0 %vm46_vm0, %v987_v11 }
0x1346   :  { %2498 = vmatpush3.bf16.msra.mxu1 %v2948_v63  ;;  %2365 = vmatprep.mubr.msk.f32.mxu1 %vm2676_vm1, %v2677_v4 }
0x1347   :  { %2499 = vmatprep.subr.bf16.mxu1 %v2675_v0 }
0x134a   :  { %2501 = vmatpush3.bf16.msra.mxu1 %v2958_v3 }
0x134b   :  { %2508 = vmatprep.subr.bf16.mxu1 %v2675_v0 }
0x1410   :  { %v941_v13 = vpop.f32.mrb[6].mxu1 }
0x1411   :  { %v2325_v12 = vpop.f32.mrb[7].mxu1 }
0x1418   :  { %v1216_v17 = vpop.f32.mrb[8].mxu1 }
0x1419   :  { %v1220_v19 = vadd.f32 %v1216_v17, %v1091_v16  ;;  %v2356_v20 = vpop.f32.mrb[9].mxu1 }
0x141b   :  { %2603 = vtanh.f32 %v1220_v19  ;;  %v2131_v22 = vmul.f32 -1.442695, %v1220_v19 }
0x141d   :  { %2605 = vpow2.f32 %v2131_v22  ;;  %v1101_v22 = vadd.f32 %v2987_v14, %v2930_v48 }
0x1425   :  { %v2604_v21 = vpop.eup %2603 }
0x1426   :  { %1234 = vrot.lane.b32.xlu0 %v2604_v21, %s2680_s23 }
0x1427   :  { %v2606_v23 = vpop.eup %2605 }
0x1428   :  { %v1224_v24 = vadd.f32 1.0, %v2606_v23 }
0x142a   :  { %2607 = vrcp.f32 %v1224_v24 }
0x1434   :  { %v2608_v25 = vpop.eup %2607 }
0x1435   :  { %v1232_v29 = vmul.f32 %v2608_v25, %v1230_v28 }
0x1498   :  { %v1235_v26 = vpop.permute.xlu0 %1234 }
0x1499   :  { %v1237_v27 = vmul.f32 %v2608_v25, %v1235_v26 }
0x149b   :  { %1239 = vrot.lane.b32.xlu0 %v1237_v27, %s2679_s8 }
0x150d   :  { %v1240_v30 = vpop.permute.xlu0 %1239 }
0x150e   :  { %v2992_v31 = vadd.f32 %v1240_v30, %v1232_v29 }
0x1510   :  { %2609 = vtanh.f32 %v2992_v31 }
0x151a   :  { %v2610_v32 = vpop.eup %2609 }
0x151b   :  { %1245 = vrot.lane.b32.xlu1 %v2610_v32, %s2680_s23 }
0x151f   :  { %99 = vperm.xlu1 %2546, %v60_v33  }
0x158d   :  { %v1246_v34 = vpop.permute.xlu1 %1245 }
0x158e   :  { %v1248_v35 = vmul.f32 %v2608_v25, %v1246_v34 }
0x1590   :  { %1250 = vrot.lane.b32.xlu0 %v1248_v35, %s2679_s8 }
0x159e   :  { %v100_v36 = vpop.permute.xlu1 %99 }
0x159f   :  { %v115_v37 = vmul.f32 %v2803_v15, %v100_v36 }
0x15a1   :  { %v130_v38 = vadd.f32 %v2809_v18, %v115_v37 }
0x15a3   :  { %v945_v39 = vadd.f32 %v941_v13, %v130_v38 }
0x15a5   :  { %2611 = vtanh.f32 %v945_v39  ;;  %v2116_v42 = vmul.f32 -1.442695, %v945_v39  ;;  %v1106_v39 = vadd.f32 %v2928_v46, %v2987_v14 }
0x15a7   :  { %2613 = vpow2.f32 %v2116_v42 }
0x15af   :  { %v2612_v40 = vpop.eup %2611 }
0x15b0   :  { %955 = vrot.lane.b32.xlu0 %v2612_v40, %s2680_s23 }
0x15b1   :  { %v2614_v15 = vpop.eup %2613 }
0x15b2   :  { %v949_v18 = vadd.f32 1.0, %v2614_v15 }
0x15b4   :  { %2615 = vrcp.f32 %v949_v18 }
0x15be   :  { %v2616_v43 = vpop.eup %2615 }
0x15bf   :  { %v953_v51 = vmul.f32 %v2616_v43, %v2938_v59 }
0x1602   :  { %v1251_v41 = vpop.permute.xlu0 %1250 }
0x1603   :  { %1253 = vst.msk [vmem:[#allocation4] sm:$0xff] %vm46_vm0, %v1251_v41  ;;  %2366 = vmatmul.mubr.msk.f32.vlgmr.msra.gmra.mrb[10].mxu1 %vm46_vm0, %v1251_v41 }
0x1604   :  { %2510 = vmatpush3.bf16.msra.mxu1 %v2948_v63  ;;  %2387 = vmatprep.mubr.msk.f32.mxu1 %vm2676_vm1, %v2677_v4 }
0x1605   :  { %2511 = vmatprep.subr.bf16.mxu1 %v2675_v0 }
0x1608   :  { %2513 = vmatpush3.bf16.msra.mxu1 %v2958_v3 }
0x1609   :  { %2520 = vmatprep.subr.bf16.mxu1 %v2675_v0 }
0x1622   :  { %v956_v45 = vpop.permute.xlu0 %955 }
0x1623   :  { %v958_v47 = vmul.f32 %v2616_v43, %v956_v45 }
0x1625   :  { %960 = vrot.lane.b32.xlu0 %v958_v47, %s2679_s8 }
0x1697   :  { %v961_v52 = vpop.permute.xlu0 %960 }
0x1698   :  { %v3013_v53 = vadd.f32 %v961_v52, %v953_v51 }
0x169a   :  { %2617 = vtanh.f32 %v3013_v53 }
0x16a4   :  { %v2618_v54 = vpop.eup %2617 }
0x16a5   :  { %966 = vrot.lane.b32.xlu0 %v2618_v54, %s2680_s23 }
0x16d6   :  { %v1323_v56 = vpop.f32.mrb[10].mxu1 }
0x16d7   :  { %v1327_v57 = vadd.f32 %v1323_v56, %v1096_v55  ;;  %v2367_v58 = vpop.f32.mrb[11].mxu1 }
0x16d9   :  { %2619 = vtanh.f32 %v1327_v57  ;;  %v2133_v62 = vmul.f32 -1.442695, %v1327_v57 }
0x16db   :  { %2621 = vpow2.f32 %v2133_v62 }
0x16e3   :  { %v2620_v60 = vpop.eup %2619 }
0x16e4   :  { %1337 = vrot.lane.b32.xlu1 %v2620_v60, %s2680_s23 }
0x16e5   :  { %v2622_v1 = vpop.eup %2621 }
0x16e6   :  { %v1331_v2 = vadd.f32 1.0, %v2622_v1 }
0x16e8   :  { %2623 = vrcp.f32 %v1331_v2 }
0x16f2   :  { %v2624_v6 = vpop.eup %2623 }
0x16f3   :  { %v1335_v5 = vmul.f32 %v2624_v6, %v2992_v31 }
0x1717   :  { %v967_v61 = vpop.permute.xlu0 %966 }
0x1718   :  { %v969_v59 = vmul.f32 %v2616_v43, %v967_v61  ;;  %v1111_v61 = vadd.f32 %v2987_v14, %v2935_v50 }
0x171a   :  { %971 = vrot.lane.b32.xlu0 %v969_v59, %s2679_s8 }
0x1756   :  { %v1338_v7 = vpop.permute.xlu1 %1337 }
0x1757   :  { %v1340_v8 = vmul.f32 %v2624_v6, %v1338_v7 }
0x1759   :  { %1342 = vrot.lane.b32.xlu1 %v1340_v8, %s2679_s8 }
0x178c   :  { %v972_v44 = vpop.permute.xlu0 %971 }
0x178d   :  { %974 = vst.msk [vmem:[#allocation4 + $0x38] sm:$0xff] %vm46_vm0, %v972_v44  ;;  %975 = vst.msk [vmem:[#allocation2] sm:$0xff] %vm46_vm0, %v972_v44 }
0x1794   :  { %v2079_v9 = vld [vmem:[#allocation2] sm:$0xff]  ;;  %v988_v10 = vld [vmem:[#allocation4 + $0x38] sm:$0xff] }
0x1795   :  { %2081 = vst.msk [vmem:[%s3151_s11] sm:$0xff] %vm46_vm0, %v2079_v9  ;;  %2344 = vmatmul.mubr.msk.f32.gmra.mrb[14].mxu0 %vm46_vm0, %v988_v10 }
0x1796   :  { %2376 = vmatprep.mubr.msk.f32.mxu0 %vm2676_vm1, %v2677_v4 }
0x17cb   :  { %v1343_v11 = vpop.permute.xlu1 %1342 }
0x17cc   :  { %v1345_v13 = vadd.f32 %v1343_v11, %v1335_v5 }
0x17ce   :  { %2625 = vtanh.f32 %v1345_v13 }
0x17d8   :  { %v2626_v12 = vpop.eup %2625 }
0x17d9   :  { %1348 = vrot.lane.b32.xlu1 %v2626_v12, %s2680_s23 }
0x184b   :  { %v1349_v16 = vpop.permute.xlu1 %1348 }
0x184c   :  { %v1351_v17 = vmul.f32 %v2624_v6, %v1349_v16 }
0x184e   :  { %1353 = vrot.lane.b32.xlu1 %v1351_v17, %s2679_s8 }
0x1868   :  { %v3034_v19 = vpop.f32.mrb[14].mxu0 }
0x1869   :  { %v3036_v20 = vpop.f32.mrb[15].mxu0 }
0x18c0   :  { %v1354_v21 = vpop.permute.xlu1 %1353 }
0x18c1   :  { %1356 = vst.msk [vmem:[#allocation4 + $0x8] sm:$0xff] %vm46_vm0, %v1354_v21  ;;  %2377 = vmatmul.mubr.msk.f32.vlgmr.msra.gmra.mrb[16].mxu0 %vm46_vm0, %v1354_v21  ;;  %v1116_v21 = vadd.f32 %v2933_v49, %v2987_v14 }
0x18c2   :  { %2516 = vmatpush3.bf16.msra.mxu0 %v2948_v63  ;;  %2398 = vmatprep.mubr.msk.f32.mxu0 %vm2676_vm1, %v2677_v4 }
0x18c3   :  { %2517 = vmatprep.subr.bf16.mxu0 %v2675_v0 }
0x18c6   :  { %2519 = vmatpush3.bf16.msra.mxu0 %v2958_v3 }
0x18c7   :  { %2526 = vmatprep.subr.bf16.mxu0 %v2675_v0 }
0x1994   :  { %v1426_v23 = vpop.f32.mrb[16].mxu0 }
0x1995   :  { %v1430_v24 = vadd.f32 %v1426_v23, %v1101_v22  ;;  %v2378_v25 = vpop.f32.mrb[17].mxu0 }
0x1997   :  { %2627 = vtanh.f32 %v1430_v24  ;;  %v2135_v27 = vmul.f32 -1.442695, %v1430_v24 }
0x1999   :  { %2629 = vpow2.f32 %v2135_v27 }
0x19a1   :  { %v2628_v26 = vpop.eup %2627 }
0x19a2   :  { %1440 = vrot.lane.b32.xlu0 %v2628_v26, %s2680_s23 }
0x19a3   :  { %v2630_v28 = vpop.eup %2629 }
0x19a4   :  { %v1434_v29 = vadd.f32 1.0, %v2630_v28 }
0x19a6   :  { %2631 = vrcp.f32 %v1434_v29 }
0x19b0   :  { %v2632_v30 = vpop.eup %2631 }
0x19b1   :  { %v1438_v33 = vmul.f32 %v2632_v30, %v1345_v13 }
0x1a14   :  { %v1441_v31 = vpop.permute.xlu0 %1440 }
0x1a15   :  { %v1443_v32 = vmul.f32 %v2632_v30, %v1441_v31 }
0x1a17   :  { %1445 = vrot.lane.b32.xlu1 %v1443_v32, %s2679_s8 }
0x1a89   :  { %v1446_v34 = vpop.permute.xlu1 %1445 }
0x1a8a   :  { %v1448_v48 = vadd.f32 %v1446_v34, %v1438_v33  ;;  %v1121_v34 = vadd.f32 %v2987_v14, %v3036_v20 }
0x1a8c   :  { %2633 = vtanh.f32 %v1448_v48 }
0x1a96   :  { %v2634_v35 = vpop.eup %2633 }
0x1a97   :  { %1451 = vrot.lane.b32.xlu0 %v2634_v35, %s2680_s23 }
0x1b09   :  { %v1452_v36 = vpop.permute.xlu0 %1451 }
0x1b0a   :  { %v1454_v37 = vmul.f32 %v2632_v30, %v1452_v36 }
0x1b0c   :  { %1456 = vrot.lane.b32.xlu1 %v1454_v37, %s2679_s8 }
0x1b7e   :  { %v1457_v38 = vpop.permute.xlu1 %1456 }
0x1b7f   :  { %1459 = vst.msk [vmem:[#allocation4 + $0x10] sm:$0xff] %vm46_vm0, %v1457_v38  ;;  %2388 = vmatmul.mubr.msk.f32.vlgmr.msra.gmra.mrb[12].mxu1 %vm46_vm0, %v1457_v38 }
0x1b80   :  { %2522 = vmatpush3.bf16.msra.mxu1 %v2948_v63  ;;  %2409 = vmatprep.mubr.msk.f32.mxu1 %vm2676_vm1, %v2677_v4 }
0x1b81   :  { %2523 = vmatprep.subr.bf16.mxu1 %v2675_v0 }
0x1b84   :  { %2525 = vmatpush3.bf16.msra.mxu1 %v2958_v3 }
0x1b85   :  { %2532 = vmatprep.subr.bf16.mxu1 %v2675_v0 }
0x1c52   :  { %v1529_v40 = vpop.f32.mrb[12].mxu1 }
0x1c53   :  { %v1533_v41 = vadd.f32 %v1529_v40, %v1106_v39  ;;  %v2389_v42 = vpop.f32.mrb[13].mxu1 }
0x1c55   :  { %2635 = vtanh.f32 %v1533_v41  ;;  %v2137_v18 = vmul.f32 -1.442695, %v1533_v41 }
0x1c57   :  { %2637 = vpow2.f32 %v2137_v18 }
0x1c5f   :  { %v2636_v15 = vpop.eup %2635 }
0x1c60   :  { %1543 = vrot.lane.b32.xlu0 %v2636_v15, %s2680_s23 }
0x1c61   :  { %v2638_v43 = vpop.eup %2637 }
0x1c62   :  { %v1537_v45 = vadd.f32 1.0, %v2638_v43 }
0x1c64   :  { %2639 = vrcp.f32 %v1537_v45 }
0x1c6e   :  { %v2640_v47 = vpop.eup %2639 }
0x1c6f   :  { %v1541_v54 = vmul.f32 %v2640_v47, %v1448_v48 }
0x1cd2   :  { %v1544_v51 = vpop.permute.xlu0 %1543 }
0x1cd3   :  { %v1546_v52 = vmul.f32 %v2640_v47, %v1544_v51 }
0x1cd5   :  { %1548 = vrot.lane.b32.xlu1 %v1546_v52, %s2679_s8 }
0x1d47   :  { %v1549_v55 = vpop.permute.xlu1 %1548 }
0x1d48   :  { %v1551_v46 = vadd.f32 %v1549_v55, %v1541_v54  ;;  %v1126_v54 = vadd.f32 %v3034_v19, %v2987_v14  ;;  %v2022_v14 = vld [vmem:[%s3152_s6 + $0x8] sm:$0xff]  ;;  %v18_v19 = vstv %s3153_s7 }
0x1d49   :  { %19 = vst [vmem:[#allocation6] sm:$0x1] %v18_v19 }
0x1d4a   :  { %2641 = vtanh.f32 %v1551_v46 }
0x1d54   :  { %v2642_v56 = vpop.eup %2641 }
0x1d55   :  { %1554 = vrot.lane.b32.xlu0 %v2642_v56, %s2680_s23 }
0x1dc7   :  { %v1555_v57 = vpop.permute.xlu0 %1554 }
0x1dc8   :  { %v1557_v58 = vmul.f32 %v2640_v47, %v1555_v57 }
0x1dca   :  { %1559 = vrot.lane.b32.xlu1 %v1557_v58, %s2679_s8 }
0x1e3c   :  { %v1560_v60 = vpop.permute.xlu1 %1559 }
0x1e3d   :  { %1562 = vst.msk [vmem:[#allocation4 + $0x18] sm:$0xff] %vm46_vm0, %v1560_v60  ;;  %2399 = vmatmul.mubr.msk.f32.vlgmr.msra.gmra.mrb[18].mxu0 %vm46_vm0, %v1560_v60 }
0x1e3e   :  { %2528 = vmatpush3.bf16.msra.mxu0 %v2948_v63  ;;  %2420 = vmatprep.mubr.msk.f32.mxu0 %vm2676_vm1, %v2677_v4 }
0x1e3f   :  { %2529 = vmatprep.subr.bf16.mxu0 %v2675_v0 }
0x1e42   :  { %2531 = vmatpush3.bf16.msra.mxu0 %v2958_v3 }
0x1f10   :  { %v1632_v59 = vpop.f32.mrb[18].mxu0 }
0x1f11   :  { %v1636_v62 = vadd.f32 %v1632_v59, %v1111_v61  ;;  %v2400_v1 = vpop.f32.mrb[19].mxu0 }
0x1f13   :  { %2643 = vtanh.f32 %v1636_v62  ;;  %v2139_v6 = vmul.f32 -1.442695, %v1636_v62 }
0x1f15   :  { %2645 = vpow2.f32 %v2139_v6 }
0x1f1d   :  { %v2644_v2 = vpop.eup %2643 }
0x1f1e   :  { %1646 = vrot.lane.b32.xlu0 %v2644_v2, %s2680_s23  ;;  %v2024_v2 = vld [vmem:[%s3152_s6 + $0x18] sm:$0xff] }
0x1f1f   :  { %v2646_v7 = vpop.eup %2645 }
0x1f20   :  { %v1640_v8 = vadd.f32 1.0, %v2646_v7 }
0x1f22   :  { %2647 = vrcp.f32 %v1640_v8 }
0x1f2c   :  { %v2648_v44 = vpop.eup %2647 }
0x1f2d   :  { %v1644_v5 = vmul.f32 %v2648_v44, %v1551_v46 }
0x1f90   :  { %v1647_v9 = vpop.permute.xlu0 %1646 }
0x1f91   :  { %v1649_v10 = vmul.f32 %v2648_v44, %v1647_v9  ;;  %v2021_v9 = vld [vmem:[%s3152_s6] sm:$0xff] }
0x1f93   :  { %1651 = vrot.lane.b32.xlu1 %v1649_v10, %s2679_s8 }
0x2005   :  { %v1652_v11 = vpop.permute.xlu1 %1651 }
0x2006   :  { %v1654_v50 = vadd.f32 %v1652_v11, %v1644_v5  ;;  %v2023_v5 = vld [vmem:[%s3152_s6 + $0x10] sm:$0xff] }
0x2008   :  { %2649 = vtanh.f32 %v1654_v50 }
0x2012   :  { %v2650_v13 = vpop.eup %2649 }
0x2013   :  { %1657 = vrot.lane.b32.xlu0 %v2650_v13, %s2680_s23 }
0x2085   :  { %v1658_v12 = vpop.permute.xlu0 %1657 }
0x2086   :  { %v1660_v16 = vmul.f32 %v2648_v44, %v1658_v12 }
0x2088   :  { %1662 = vrot.lane.b32.xlu1 %v1660_v16, %s2679_s8 }
0x20fa   :  { %v1663_v17 = vpop.permute.xlu1 %1662 }
0x20fb   :  { %1665 = vst.msk [vmem:[#allocation4 + $0x20] sm:$0xff] %vm46_vm0, %v1663_v17  ;;  %2410 = vmatmul.mubr.msk.f32.vlgmr.msra.gmra.mrb[14].mxu1 %vm46_vm0, %v1663_v17 }
0x20fc   :  { %2534 = vmatpush3.bf16.msra.mxu1 %v2948_v63  ;;  %2431 = vmatprep.mubr.msk.f32.mxu1 %vm2676_vm1, %v2677_v4 }
0x20fd   :  { %2535 = vmatprep.subr.bf16.mxu1 %v2675_v0 }
0x2100   :  { %2537 = vmatpush3.bf16.msra.mxu1 %v2958_v3 }
0x21ce   :  { %v1735_v22 = vpop.f32.mrb[14].mxu1 }
0x21cf   :  { %v1739_v23 = vadd.f32 %v1735_v22, %v1116_v21  ;;  %v2411_v24 = vpop.f32.mrb[15].mxu1 }
0x21d1   :  { %2651 = vtanh.f32 %v1739_v23  ;;  %v2141_v26 = vmul.f32 -1.442695, %v1739_v23 }
0x21d3   :  { %2653 = vpow2.f32 %v2141_v26  ;;  %v1982_v26 = vld [vmem:[#allocation4 + $0x8] sm:$0xff] }
0x21db   :  { %v2652_v25 = vpop.eup %2651 }
0x21dc   :  { %1749 = vrot.lane.b32.xlu0 %v2652_v25, %s2680_s23  ;;  %v1981_v25 = vld [vmem:[#allocation4] sm:$0xff] }
0x21dd   :  { %v2654_v63 = vpop.eup %2653 }
0x21de   :  { %v1743_v27 = vadd.f32 1.0, %v2654_v63  ;;  %v1983_v63 = vld [vmem:[#allocation4 + $0x10] sm:$0xff] }
0x21e0   :  { %2655 = vrcp.f32 %v1743_v27  ;;  %v1984_v27 = vld [vmem:[#allocation4 + $0x18] sm:$0xff] }
0x21ea   :  { %v2656_v4 = vpop.eup %2655 }
0x21eb   :  { %v1747_v3 = vmul.f32 %v2656_v4, %v1654_v50 }
0x224e   :  { %v1750_v28 = vpop.permute.xlu0 %1749 }
0x224f   :  { %v1752_v0 = vmul.f32 %v2656_v4, %v1750_v28 }
0x2251   :  { %1754 = vrot.lane.b32.xlu1 %v1752_v0, %s2679_s8 }
0x22c3   :  { %v1755_v29 = vpop.permute.xlu1 %1754 }
0x22c4   :  { %v1757_v49 = vadd.f32 %v1755_v29, %v1747_v3 }
0x22c6   :  { %2657 = vtanh.f32 %v1757_v49 }
0x22d0   :  { %v2658_v30 = vpop.eup %2657 }
0x22d1   :  { %1760 = vrot.lane.b32.xlu0 %v2658_v30, %s2680_s23 }
0x2343   :  { %v1761_v31 = vpop.permute.xlu0 %1760 }
0x2344   :  { %v1763_v32 = vmul.f32 %v2656_v4, %v1761_v31  ;;  %v1985_v4 = vld [vmem:[#allocation4 + $0x20] sm:$0xff] }
0x2346   :  { %1765 = vrot.lane.b32.xlu1 %v1763_v32, %s2679_s8 }
0x23b8   :  { %v1766_v33 = vpop.permute.xlu1 %1765 }
0x23b9   :  { %1768 = vst.msk [vmem:[#allocation4 + $0x28] sm:$0xff] %vm46_vm0, %v1766_v33  ;;  %2421 = vmatmul.mubr.msk.f32.vlgmr.msra.gmra.mrb[20].mxu0 %vm46_vm0, %v1766_v33 }
0x23c0   :  { %v1986_v28 = vld [vmem:[#allocation4 + $0x28] sm:$0xff] }
0x248c   :  { %v1838_v48 = vpop.f32.mrb[20].mxu0 }
0x248d   :  { %v1842_v35 = vadd.f32 %v1838_v48, %v1121_v34  ;;  %v2422_v36 = vpop.f32.mrb[21].mxu0 }
0x248f   :  { %2659 = vtanh.f32 %v1842_v35  ;;  %v2143_v38 = vmul.f32 -1.442695, %v1842_v35 }
0x2491   :  { %2661 = vpow2.f32 %v2143_v38 }
0x2499   :  { %v2660_v37 = vpop.eup %2659 }
0x249a   :  { %1852 = vrot.lane.b32.xlu0 %v2660_v37, %s2680_s23 }
0x249b   :  { %v2662_v39 = vpop.eup %2661 }
0x249c   :  { %v1846_v40 = vadd.f32 1.0, %v2662_v39 }
0x249e   :  { %2663 = vrcp.f32 %v1846_v40 }
0x24a8   :  { %v2664_v41 = vpop.eup %2663 }
0x24a9   :  { %v1850_v18 = vmul.f32 %v2664_v41, %v1757_v49 }
0x250c   :  { %v1853_v42 = vpop.permute.xlu0 %1852 }
0x250d   :  { %v1855_v15 = vmul.f32 %v2664_v41, %v1853_v42 }
0x250f   :  { %1857 = vrot.lane.b32.xlu1 %v1855_v15, %s2679_s8  ;;  %v2069_v15 = vlaneseq }
0x2581   :  { %v1858_v43 = vpop.permute.xlu1 %1857 }
0x2582   :  { %v1860_v20 = vadd.f32 %v1858_v43, %v1850_v18 }
0x2584   :  { %2665 = vtanh.f32 %v1860_v20 }
0x258e   :  { %v2666_v45 = vpop.eup %2665 }
0x258f   :  { %1863 = vrot.lane.b32.xlu0 %v2666_v45, %s2680_s23 }
0x2601   :  { %v1864_v47 = vpop.permute.xlu0 %1863 }
0x2602   :  { %v1866_v51 = vmul.f32 %v2664_v41, %v1864_v47 }
0x2604   :  { %1868 = vrot.lane.b32.xlu1 %v1866_v51, %s2679_s8 }
0x2676   :  { %v1869_v52 = vpop.permute.xlu1 %1868 }
0x2677   :  { %1871 = vst.msk [vmem:[#allocation4 + $0x30] sm:$0xff] %vm46_vm0, %v1869_v52  ;;  %2432 = vmatmul.mubr.msk.f32.vlgmr.msra.gmra.mrb[16].mxu1 %vm46_vm0, %v1869_v52 }
0x267e   :  { %v1987_v0 = vld [vmem:[#allocation4 + $0x30] sm:$0xff] }
0x274a   :  { %v1941_v55 = vpop.f32.mrb[16].mxu1 }
0x274b   :  { %v1945_v46 = vadd.f32 %v1941_v55, %v1126_v54  ;;  %v2433_v56 = vpop.f32.mrb[17].mxu1 }
0x274d   :  { %2667 = vtanh.f32 %v1945_v46  ;;  %v2145_v58 = vmul.f32 -1.442695, %v1945_v46 }
0x274f   :  { %2669 = vpow2.f32 %v2145_v58 }
0x2757   :  { %v2668_v57 = vpop.eup %2667 }
0x2758   :  { %1955 = vrot.lane.b32.xlu0 %v2668_v57, %s2680_s23 }
0x2759   :  { %v2670_v60 = vpop.eup %2669 }
0x275a   :  { %v1949_v61 = vadd.f32 1.0, %v2670_v60 }
0x275c   :  { %2671 = vrcp.f32 %v1949_v61 }
0x2766   :  { %v2672_v59 = vpop.eup %2671 }
0x2767   :  { %v1953_v6 = vmul.f32 %v2672_v59, %v1860_v20  ;;  %v2070_v20 = vshrl.u32 %v2069_v15, 7 }
0x2769   :  { %v2071_v51 = vsub.s32 0, %v2070_v20 }
0x27ca   :  { %v1956_v62 = vpop.permute.xlu0 %1955 }
0x27cb   :  { %v1958_v1 = vmul.f32 %v2672_v59, %v1956_v62 }
0x27cd   :  { %1960 = vrot.lane.b32.xlu1 %v1958_v1, %s2679_s8 }
0x27d1   :  { %2032 = vperm.xlu1 %2546, %v2022_v14  }
0x27d5   :  { %2042 = vperm.xlu1 %2546, %v2024_v2  }
0x27d9   :  { %977 = vrot.lane.b32.xlu1 %v3013_v53, %s2681_s22  ;;  %v2063_v53 = vld [vmem:[#allocation6] sm:$0x1] }
0x283f   :  { %v1961_v7 = vpop.permute.xlu1 %1960 }
0x2840   :  { %v1963_v8 = vadd.f32 %v1961_v7, %v1953_v6 }
0x2842   :  { %2673 = vtanh.f32 %v1963_v8 }
0x284c   :  { %v2674_v44 = vpop.eup %2673 }
0x284d   :  { %1966 = vrot.lane.b32.xlu0 %v2674_v44, %s2680_s23 }
0x2850   :  { %v2033_v10 = vpop.permute.xlu1 %2032 }
0x2851   :  { %2027 = vperm.xlu0 %2545, %v2021_v9  }
0x2854   :  { %v2043_v11 = vpop.permute.xlu1 %2042 }
0x2855   :  { %2037 = vperm.xlu0 %2545, %v2023_v5  }
0x2858   :  { %v978_v50 = vpop.permute.xlu1 %977 }
0x2859   :  { %980 = vst.msk [vmem:[#allocation3] sm:$0xff] %vm46_vm0, %v978_v50  ;;  %2066 = vperm.xlu0 %2545, %v2063_v53  }
0x285d   :  { %1977 = vrot.lane.b32.xlu0 %v1963_v8, %s2681_s22 }
0x2860   :  { %v2083_v13 = vld [vmem:[#allocation3] sm:$0xff] }
0x2861   :  { %2085 = vst.msk [vmem:[%s3154_s12] sm:$0xff] %vm46_vm0, %v2083_v13 }
0x28bf   :  { %v1967_v12 = vpop.permute.xlu0 %1966 }
0x28c0   :  { %v1969_v16 = vmul.f32 %v2672_v59, %v1967_v12 }
0x28c2   :  { %1971 = vrot.lane.b32.xlu1 %v1969_v16, %s2679_s8 }
0x28d0   :  { %v2028_v17 = vpop.permute.xlu0 %2027 }
0x28d4   :  { %v2038_v21 = vpop.permute.xlu0 %2037 }
0x28d8   :  { %v2067_v22 = vpop.permute.xlu0 %2066 }
0x28d9   :  { %v2072_v55 = vrot.slane %v2067_v22, %v2071_v51 }
0x28dc   :  { %v1978_v23 = vpop.permute.xlu0 %1977 }
0x28dd   :  { %1980 = vst.msk [vmem:[#allocation3 + $0x8] sm:$0xff] %vm46_vm0, %v1978_v23 }
0x28e4   :  { %v2084_v24 = vld [vmem:[#allocation3 + $0x8] sm:$0xff] }
0x28e5   :  { %2086 = vst.msk [vmem:[%s3154_s12 + $0x8] sm:$0xff] %vm46_vm0, %v2084_v24 }
0x28eb   :  { %1989 = vxpose.xlu1.b32.start [1/8] (short) (narrow) %v1981_v25, 32 }
0x28ef   :  { %1990 = vxpose.xlu1.b32.cont [2/8] (short) (narrow) %v1982_v26, 32 }
0x28f3   :  { %1991 = vxpose.xlu1.b32.cont [3/8] (short) (narrow) %v1983_v63, 32 }
0x28f7   :  { %1992 = vxpose.xlu1.b32.cont [4/8] (short) (narrow) %v1984_v27, 32 }
0x28fb   :  { %1993 = vxpose.xlu1.b32.cont [5/8] (short) (narrow) %v1985_v4, 32 }
0x28ff   :  { %1994 = vxpose.xlu1.b32.cont [6/8] (short) (narrow) %v1986_v28, 32 }
0x2903   :  { %1995 = vxpose.xlu1.b32.cont [7/8] (short) (narrow) %v1987_v0, 32 }
0x2934   :  { %v1972_v3 = vpop.permute.xlu1 %1971 }
0x2935   :  { %1974 = vst.msk [vmem:[#allocation4 + $0x38] sm:$0xff] %vm46_vm0, %v1972_v3  ;;  %1975 = vst.msk [vmem:[#allocation2 + $0x8] sm:$0xff] %vm46_vm0, %v1972_v3 }
0x293c   :  { %v2080_v29 = vld [vmem:[#allocation2 + $0x8] sm:$0xff]  ;;  %v1988_v49 = vld [vmem:[#allocation4 + $0x38] sm:$0xff] }
0x293d   :  { %2082 = vst.msk [vmem:[%s3151_s11 + $0x8] sm:$0xff] %vm46_vm0, %v2080_v29  ;;  %1996 = vxpose.xlu1.b32.end [8/8] (short) (narrow) %v1988_v49, 32 }
0x29a1   :  { %v2005_v30 = vpop.trf.xlu1 }
0x29a2   :  { %v2045_v33 = vmul.f32 %v2028_v17, %v2005_v30 }
0x29a4   :  { %v2050_v36 = vsel %vm2049_vm2, %v2045_v33, 0.0 }
0x29a5   :  { %v2006_v31 = vpop.trf.xlu1 }
0x29a6   :  { %v2046_v32 = vmul.f32 %v2033_v10, %v2006_v31 }
0x29a8   :  { %v2051_v48 = vsel %vm2049_vm2, %v2046_v32, 0.0 }
0x29a9   :  { %v2007_v34 = vpop.trf.xlu1  ;;  %v2052_v38 = vadd.f32 %v2051_v48, %v2050_v36 }
0x29aa   :  { %v2047_v35 = vmul.f32 %v2038_v21, %v2007_v34 }
0x29ac   :  { %v2053_v37 = vsel %vm2049_vm2, %v2047_v35, 0.0 }
0x29ad   :  { %v2008_v39 = vpop.trf.xlu1  ;;  %v2054_v41 = vadd.f32 %v2053_v37, %v2052_v38 }
0x29ae   :  { %v2048_v40 = vmul.f32 %v2043_v11, %v2008_v39 }
0x29b0   :  { %v2055_v42 = vsel %vm2049_vm2, %v2048_v40, 0.0 }
0x29b1   :  { %v2056_v18 = vadd.f32 %v2055_v42, %v2054_v41 }
0x29b3   :  { %v2057_v43 = vrot.slane %v2056_v18, 4 }
0x29b5   :  { %v2058_v45 = vadd.f32 %v2057_v43, %v2056_v18 }
0x29b7   :  { %v2059_v47 = vrot.slane %v2058_v45, 2 }
0x29b9   :  { %v2060_v52 = vadd.f32 %v2059_v47, %v2058_v45 }
0x29bb   :  { %v2061_v54 = vrot.slane %v2060_v52, 1 }
0x29bd   :  { %v2062_v46 = vadd.f32 %v2061_v54, %v2060_v52 }
0x29bf   :  { %v2073_v56 = vadd.f32 %v2072_v55, %v2062_v46 }
0x29c1   :  { %2075 = vst.msk [vmem:[%s3155_s10] sm:$0x1] %vm2074_vm3, %v2073_v56 }

</bundles_post_ra>
